<compile_context>
chip_gen: v7x
topology: tpu7x:2x2x1
jax: 0.10.0
libtpu: 0.0.40
codegen_flags: <defaults>
</compile_context>

<pallas_src>
import jax
import jax.numpy as jnp
import numpy as np
from jax.experimental import pallas as pl
from jax.experimental.pallas import tpu as pltpu


# ----------------------------- Pallas kernel ------------------------------- #

def _meshgen_fused_kernel(
    x_ref,                      # (B, 50, Fin)                 f32
    m1_ref, c1_ref,             # (8, 50)   bf16, (8, 1)   f32  [L1 @ unpool1]
    m2_ref, c2_ref,             # (32, 8)   bf16, (32, 1)  f32  [L2 @ unpool2]
    m3_ref, c3_ref,             # (128, 32) bf16, (128, 1) f32  [L3 @ unpool3]
    l1_ref, l2_ref, l3_ref,     # (8,8), (32,32), (128,128)  bf16 normalized Laplacians
    w11_ref, b11_ref,           # (Fin, 512) bf16, (1, 512) f32   (pre-transposed)
    w12_ref, b12_ref,           # (512, 256) bf16, (1, 256) f32
    w21_ref, b21_ref,           # (256, 128) bf16, (1, 128) f32
    w22_ref, b22_ref,           # (128, 64)  bf16, (1, 64)  f32
    w31_ref, b31_ref,           # (64, 16)   bf16, (1, 16)  f32
    w32_ref, b32_ref,           # (Fout, 16) f32,  (Fout, 1) f32  (kept (out,in) for transposed final)
    o_ref,                      # (B, Fout, 128) f32  (lane-dense, transposed output)
):
    bf16 = jnp.bfloat16
    f32 = jnp.float32

    def fused_unpool_lap(x, m_ref, c_ref):
        # (L @ W_unpool) @ x + (L @ b_unpool)
        return jnp.dot(m_ref[...], x.astype(bf16),
                       preferred_element_type=f32) + c_ref[...]

    def lap(x, l_ref):
        return jnp.dot(l_ref[...], x.astype(bf16), preferred_element_type=f32)

    def fc(y, w_ref, b_ref):
        # plain (M,K)x(K,N) matmul against pre-transposed weight, + bias, ReLU (f32)
        z = jnp.dot(y.astype(bf16), w_ref[...],
                    preferred_element_type=f32) + b_ref[...]
        return jnp.maximum(z, 0.0)

    B = x_ref.shape[0]
    # Static unroll over batch: the two independent matmul chains are interleaved
    # by the scheduler, hiding MXU fill/drain latency on single-TC chips.
    for b in range(B):
        x = x_ref[b]                                    # (50, Fin)  f32
        # ---- stage 1 (unpool1 folded into gconv11's Laplacian) ----
        y = fused_unpool_lap(x, m1_ref, c1_ref)         # (8, Fin)
        x = fc(y, w11_ref, b11_ref)                     # (8, 512)
        x = fc(lap(x, l1_ref), w12_ref, b12_ref)        # (8, 256)
        # ---- stage 2 ----
        y = fused_unpool_lap(x, m2_ref, c2_ref)         # (32, 256)
        x = fc(y, w21_ref, b21_ref)                     # (32, 128)
        x = fc(lap(x, l2_ref), w22_ref, b22_ref)        # (32, 64)
        # ---- stage 3 ----
        y = fused_unpool_lap(x, m3_ref, c3_ref)         # (128, 64)
        x = fc(y, w31_ref, b31_ref)                     # (128, 16)
        y32 = lap(x, l3_ref)                            # (128, 16)  f32
        # Final gconv (no activation), computed transposed for a lane-dense store:
        #   z^T = W32 @ y32^T + b32  -> (Fout, 128)
        zT = jax.lax.dot_general(
            w32_ref[...], y32, (((1,), (1,)), ((), ())),
            preferred_element_type=f32) + b32_ref[...]
        o_ref[b] = zT


# ------------------------------ Wrappers ----------------------------------- #

def _normalized_laplacian(a):
    # laplacian_batch with un-batched A (A_hat identical per batch element):
    # D_hat[j] = (sum_i A[i, j] + 1e-5) ** (-0.5) ;  L = D_hat[:,None]*A*D_hat[None,:]
    d = jax.lax.rsqrt(jnp.sum(a, axis=0) + 1e-5)
    return d[:, None] * a * d[None, :]


def meshgen_forward(params, X):
    B, N_in, Fin = X.shape
    l1 = params["A_1"].shape[0]
    l2 = params["A_2"].shape[0]
    l3 = params["A_3"].shape[0]
    Fout = params["gconv32_w"].shape[0]

    f32 = jnp.float32
    bf16 = jnp.bfloat16

    # Laplacians are batch-independent: build them once outside the kernel.
    L1 = _normalized_laplacian(params["A_1"])
    L2 = _normalized_laplacian(params["A_2"])
    L3 = _normalized_laplacian(params["A_3"])

    # Fold each GraphUnpool into the following Laplacian multiply:
    #   L @ (W_u @ x + b_u) == (L @ W_u) @ x + (L @ b_u)
    M1 = L1 @ params["unpool1_w"]
    M2 = L2 @ params["unpool2_w"]
    M3 = L3 @ params["unpool3_w"]
    c1 = (L1 @ params["unpool1_b"].reshape(l1, 1)).astype(f32)
    c2 = (L2 @ params["unpool2_b"].reshape(l2, 1)).astype(f32)
    c3 = (L3 @ params["unpool3_b"].reshape(l3, 1)).astype(f32)

    operands = [
        X.astype(f32),
        M1.astype(bf16), c1,
        M2.astype(bf16), c2,
        M3.astype(bf16), c3,
        L1.astype(bf16), L2.astype(bf16), L3.astype(bf16),
        # gconv weights pre-transposed to (in, out); biases as (1, out) rows.
        params["gconv11_w"].T.astype(bf16), params["gconv11_b"].reshape(1, -1).astype(f32),
        params["gconv12_w"].T.astype(bf16), params["gconv12_b"].reshape(1, -1).astype(f32),
        params["gconv21_w"].T.astype(bf16), params["gconv21_b"].reshape(1, -1).astype(f32),
        params["gconv22_w"].T.astype(bf16), params["gconv22_b"].reshape(1, -1).astype(f32),
        params["gconv31_w"].T.astype(bf16), params["gconv31_b"].reshape(1, -1).astype(f32),
        # Final gconv kept in torch (out, in) layout + column bias for transposed compute.
        params["gconv32_w"].astype(f32), params["gconv32_b"].reshape(-1, 1).astype(f32),
    ]

    # Single grid step; everything fits in VMEM with large margin (~1 MiB total).
    in_specs = [
        pl.BlockSpec(op.shape, lambda i, nd=op.ndim: (0,) * nd) for op in operands
    ]

    flops = 2 * B * (
        l1 * N_in * Fin + l1 * Fin * 512 + l1 * l1 * 512 + l1 * 512 * 256
        + l2 * l1 * 256 + l2 * 256 * 128 + l2 * l2 * 128 + l2 * 128 * 64
        + l3 * l2 * 64 + l3 * 64 * 16 + l3 * l3 * 16 + Fout * 16 * l3)
    bytes_accessed = int(
        sum(int(np.prod(op.shape)) * op.dtype.itemsize for op in operands)
        + B * l3 * Fout * 4)

    out_t = pl.pallas_call(
        _meshgen_fused_kernel,
        out_shape=jax.ShapeDtypeStruct((B, Fout, l3), f32),
        grid=(1,),
        in_specs=in_specs,
        out_specs=pl.BlockSpec((B, Fout, l3), lambda i: (0, 0, 0)),
        compiler_params=pltpu.CompilerParams(
            dimension_semantics=("arbitrary",)),
        cost_estimate=pl.CostEstimate(
            flops=int(flops), transcendentals=0, bytes_accessed=bytes_accessed),
    )(*operands)

    # Lane-dense kernel output (B, Fout, l3) -> module layout (B, l3, Fout).
    return jnp.transpose(out_t, (0, 2, 1))


# --------------------------- Parameter setup -------------------------------- #

def _init_linear(key, out_f, in_f):
    # Deterministic synthetic init (shapes match torch.nn.Linear).
    k_w, k_b = jax.random.split(key)
    bound = 1.0 / np.sqrt(in_f)
    w = jax.random.uniform(k_w, (out_f, in_f), jnp.float32, -bound, bound)
    b = jax.random.uniform(k_b, (out_f,), jnp.float32, -bound, bound)
    return w, b


def init_meshgen_params(key, in_features=3, out_features=3, n=128):
    l3 = n
    l2 = l3 // 4
    l1 = l2 // 4
    keys = jax.random.split(key, 9)
    p = {}
    # Adjacency parameters (identity init, as in the module's __init__).
    p["A_1"] = jnp.eye(l1, dtype=jnp.float32)
    p["A_2"] = jnp.eye(l2, dtype=jnp.float32)
    p["A_3"] = jnp.eye(l3, dtype=jnp.float32)
    # Unpool linears (node-dim linears).
    p["unpool1_w"], p["unpool1_b"] = _init_linear(keys[0], l1, 50)
    p["unpool2_w"], p["unpool2_b"] = _init_linear(keys[1], l2, l1)
    p["unpool3_w"], p["unpool3_b"] = _init_linear(keys[2], l3, l2)
    # Graph-conv linears (feature-dim linears).
    p["gconv11_w"], p["gconv11_b"] = _init_linear(keys[3], 512, in_features)
    p["gconv12_w"], p["gconv12_b"] = _init_linear(keys[4], 256, 512)
    p["gconv21_w"], p["gconv21_b"] = _init_linear(keys[5], 128, 256)
    p["gconv22_w"], p["gconv22_b"] = _init_linear(keys[6], 64, 128)
    p["gconv31_w"], p["gconv31_b"] = _init_linear(keys[7], 16, 64)
    p["gconv32_w"], p["gconv32_b"] = _init_linear(keys[8], out_features, 16)
    return p


# ---------------------------- Pure-JAX reference ---------------------------- #

def _meshgen_reference(params, X):
    hp = jax.lax.Precision.HIGHEST

    def unpool(x, w, b):
        return jnp.einsum("oi,bif->bof", w, x, precision=hp) + b[None, :, None]

    def gconv(x, a, w, b, relu):
        L = _normalized_laplacian(a)
        y = jnp.einsum("ij,bjf->bif", L, x, precision=hp)
        z = jnp.einsum("bif,of->bio", y, w, precision=hp) + b[None, None, :]
        return jnp.maximum(z, 0.0) if relu else z

    X = unpool(X, params["unpool1_w"], params["unpool1_b"])
    X = gconv(X, params["A_1"], params["gconv11_w"], params["gconv11_b"], True)
    X = gconv(X, params["A_1"], params["gconv12_w"], params["gconv12_b"], True)
    X = unpool(X, params["unpool2_w"], params["unpool2_b"])
    X = gconv(X, params["A_2"], params["gconv21_w"], params["gconv21_b"], True)
    X = gconv(X, params["A_2"], params["gconv22_w"], params["gconv22_b"], True)
    X = unpool(X, params["unpool3_w"], params["unpool3_b"])
    X = gconv(X, params["A_3"], params["gconv31_w"], params["gconv31_b"], True)
    X = gconv(X, params["A_3"], params["gconv32_w"], params["gconv32_b"], False)
    return X


# --------------------------------- Main -------------------------------------- #

if __name__ == "__main__":
    key = jax.random.PRNGKey(0)
    k_params, k_x = jax.random.split(key)

    # Small mesh: n=128 -> l3=128, l2=32, l1=8.  Input is (batch, 50, 3) since
    # unpool1 is GraphUnpool(50, l1) and in_features=3.
    batch, in_features, out_features, n = 2, 3, 3, 128
    params = init_meshgen_params(k_params, in_features, out_features, n)
    X = jax.random.normal(k_x, (batch, 50, in_features), dtype=jnp.float32)

    out = jax.jit(meshgen_forward)(params, X)
    out = jax.block_until_ready(out)
    assert out.shape == (batch, n, out_features), out.shape

    ref = _meshgen_reference(params, X)
    np.testing.assert_allclose(np.asarray(out), np.asarray(ref), rtol=1e-2, atol=1e-2)

    print("KERNEL_OK")
</pallas_src>

<mosaic_0001>
module attributes {stable_mosaic.version = 11 : i64} {
  func.func @_meshgen_fused_kernel(%arg0: i32, %arg1: memref<2x50x3xf32, #tpu.memory_space<vmem>>, %arg2: memref<8x50xbf16, #tpu.memory_space<vmem>>, %arg3: memref<8x1xf32, #tpu.memory_space<vmem>>, %arg4: memref<32x8xbf16, #tpu.memory_space<vmem>>, %arg5: memref<32x1xf32, #tpu.memory_space<vmem>>, %arg6: memref<128x32xbf16, #tpu.memory_space<vmem>>, %arg7: memref<128x1xf32, #tpu.memory_space<vmem>>, %arg8: memref<8x8xbf16, #tpu.memory_space<vmem>>, %arg9: memref<32x32xbf16, #tpu.memory_space<vmem>>, %arg10: memref<128x128xbf16, #tpu.memory_space<vmem>>, %arg11: memref<3x512xbf16, #tpu.memory_space<vmem>>, %arg12: memref<1x512xf32, #tpu.memory_space<vmem>>, %arg13: memref<512x256xbf16, #tpu.memory_space<vmem>>, %arg14: memref<1x256xf32, #tpu.memory_space<vmem>>, %arg15: memref<256x128xbf16, #tpu.memory_space<vmem>>, %arg16: memref<1x128xf32, #tpu.memory_space<vmem>>, %arg17: memref<128x64xbf16, #tpu.memory_space<vmem>>, %arg18: memref<1x64xf32, #tpu.memory_space<vmem>>, %arg19: memref<64x16xbf16, #tpu.memory_space<vmem>>, %arg20: memref<1x16xf32, #tpu.memory_space<vmem>>, %arg21: memref<3x16xf32, #tpu.memory_space<vmem>>, %arg22: memref<3x1xf32, #tpu.memory_space<vmem>>, %arg23: memref<2x3x128xf32, #tpu.memory_space<vmem>>) attributes {dimension_semantics = [#tpu.dimension_semantics<arbitrary>], iteration_bounds = array<i64: 1>, scalar_prefetch = 0 : i64, scratch_operands = 0 : i64, tpu.core_type = #tpu.core_type<tc>, window_params = [{pipeline_mode = #tpu.pipeline_mode<synchronous>, transform_indices = @transform_0, window_bounds = array<i64: 2, 50, 3>}, {pipeline_mode = #tpu.pipeline_mode<synchronous>, transform_indices = @transform_1, window_bounds = array<i64: 8, 50>}, {pipeline_mode = #tpu.pipeline_mode<synchronous>, transform_indices = @transform_2, window_bounds = array<i64: 8, 1>}, {pipeline_mode = #tpu.pipeline_mode<synchronous>, transform_indices = @transform_3, window_bounds = array<i64: 32, 8>}, {pipeline_mode = #tpu.pipeline_mode<synchronous>, transform_indices = @transform_4, window_bounds = array<i64: 32, 1>}, {pipeline_mode = #tpu.pipeline_mode<synchronous>, transform_indices = @transform_5, window_bounds = array<i64: 128, 32>}, {pipeline_mode = #tpu.pipeline_mode<synchronous>, transform_indices = @transform_6, window_bounds = array<i64: 128, 1>}, {pipeline_mode = #tpu.pipeline_mode<synchronous>, transform_indices = @transform_7, window_bounds = array<i64: 8, 8>}, {pipeline_mode = #tpu.pipeline_mode<synchronous>, transform_indices = @transform_8, window_bounds = array<i64: 32, 32>}, {pipeline_mode = #tpu.pipeline_mode<synchronous>, transform_indices = @transform_9, window_bounds = array<i64: 128, 128>}, {pipeline_mode = #tpu.pipeline_mode<synchronous>, transform_indices = @transform_10, window_bounds = array<i64: 3, 512>}, {pipeline_mode = #tpu.pipeline_mode<synchronous>, transform_indices = @transform_11, window_bounds = array<i64: 1, 512>}, {pipeline_mode = #tpu.pipeline_mode<synchronous>, transform_indices = @transform_12, window_bounds = array<i64: 512, 256>}, {pipeline_mode = #tpu.pipeline_mode<synchronous>, transform_indices = @transform_13, window_bounds = array<i64: 1, 256>}, {pipeline_mode = #tpu.pipeline_mode<synchronous>, transform_indices = @transform_14, window_bounds = array<i64: 256, 128>}, {pipeline_mode = #tpu.pipeline_mode<synchronous>, transform_indices = @transform_15, window_bounds = array<i64: 1, 128>}, {pipeline_mode = #tpu.pipeline_mode<synchronous>, transform_indices = @transform_16, window_bounds = array<i64: 128, 64>}, {pipeline_mode = #tpu.pipeline_mode<synchronous>, transform_indices = @transform_17, window_bounds = array<i64: 1, 64>}, {pipeline_mode = #tpu.pipeline_mode<synchronous>, transform_indices = @transform_18, window_bounds = array<i64: 64, 16>}, {pipeline_mode = #tpu.pipeline_mode<synchronous>, transform_indices = @transform_19, window_bounds = array<i64: 1, 16>}, {pipeline_mode = #tpu.pipeline_mode<synchronous>, transform_indices = @transform_20, window_bounds = array<i64: 3, 16>}, {pipeline_mode = #tpu.pipeline_mode<synchronous>, transform_indices = @transform_21, window_bounds = array<i64: 3, 1>}, {pipeline_mode = #tpu.pipeline_mode<synchronous>, transform_indices = @transform_22, window_bounds = array<i64: 2, 3, 128>}]} {
    %c0 = arith.constant 0 : index
    %c0_0 = arith.constant 0 : index
    %c0_1 = arith.constant 0 : index
    %0 = vector.load %arg1[%c0, %c0_0, %c0_1] : memref<2x50x3xf32, #tpu.memory_space<vmem>>, vector<1x50x3xf32>
    %1 = vector.shape_cast %0 : vector<1x50x3xf32> to vector<50x3xf32>
    %c0_2 = arith.constant 0 : index
    %c0_3 = arith.constant 0 : index
    %2 = vector.load %arg2[%c0_2, %c0_3] : memref<8x50xbf16, #tpu.memory_space<vmem>>, vector<8x50xbf16>
    %3 = arith.truncf %1 : vector<50x3xf32> to vector<50x3xbf16>
    %cst = arith.constant dense<0.000000e+00> : vector<8x3xf32>
    %4 = tpu.matmul %2, %3, %cst {dimension_numbers = #tpu.dot_dimension_numbers<[1], [0], [0], [1], [0, 0, 1, 1], [], []>} : vector<8x50xbf16>, vector<50x3xbf16>, vector<8x3xf32> -> vector<8x3xf32>
    %c0_4 = arith.constant 0 : index
    %c0_5 = arith.constant 0 : index
    %5 = vector.load %arg3[%c0_4, %c0_5] : memref<8x1xf32, #tpu.memory_space<vmem>>, vector<8x1xf32>
    %6 = vector.broadcast %5 : vector<8x1xf32> to vector<8x3xf32>
    %7 = arith.addf %4, %6 : vector<8x3xf32>
    %8 = arith.truncf %7 : vector<8x3xf32> to vector<8x3xbf16>
    %c0_6 = arith.constant 0 : index
    %c0_7 = arith.constant 0 : index
    %9 = vector.load %arg11[%c0_6, %c0_7] : memref<3x512xbf16, #tpu.memory_space<vmem>>, vector<3x512xbf16>
    %cst_8 = arith.constant dense<0.000000e+00> : vector<8x512xf32>
    %10 = tpu.matmul %8, %9, %cst_8 {dimension_numbers = #tpu.dot_dimension_numbers<[1], [0], [0], [1], [0, 0, 1, 1], [], []>} : vector<8x3xbf16>, vector<3x512xbf16>, vector<8x512xf32> -> vector<8x512xf32>
    %c0_9 = arith.constant 0 : index
    %c0_10 = arith.constant 0 : index
    %11 = vector.load %arg12[%c0_9, %c0_10] : memref<1x512xf32, #tpu.memory_space<vmem>>, vector<1x512xf32>
    %12 = vector.broadcast %11 : vector<1x512xf32> to vector<8x512xf32>
    %13 = arith.addf %10, %12 : vector<8x512xf32>
    %cst_11 = arith.constant 0.000000e+00 : f32
    %14 = vector.broadcast %cst_11 : f32 to vector<8x512xf32>
    %15 = arith.maximumf %13, %14 : vector<8x512xf32>
    %c0_12 = arith.constant 0 : index
    %c0_13 = arith.constant 0 : index
    %16 = vector.load %arg8[%c0_12, %c0_13] : memref<8x8xbf16, #tpu.memory_space<vmem>>, vector<8x8xbf16>
    %17 = arith.truncf %15 : vector<8x512xf32> to vector<8x512xbf16>
    %cst_14 = arith.constant dense<0.000000e+00> : vector<8x512xf32>
    %18 = tpu.matmul %16, %17, %cst_14 {dimension_numbers = #tpu.dot_dimension_numbers<[1], [0], [0], [1], [0, 0, 1, 1], [], []>} : vector<8x8xbf16>, vector<8x512xbf16>, vector<8x512xf32> -> vector<8x512xf32>
    %19 = arith.truncf %18 : vector<8x512xf32> to vector<8x512xbf16>
    %c0_15 = arith.constant 0 : index
    %c0_16 = arith.constant 0 : index
    %20 = vector.load %arg13[%c0_15, %c0_16] : memref<512x256xbf16, #tpu.memory_space<vmem>>, vector<512x256xbf16>
    %cst_17 = arith.constant dense<0.000000e+00> : vector<8x256xf32>
    %21 = tpu.matmul %19, %20, %cst_17 {dimension_numbers = #tpu.dot_dimension_numbers<[1], [0], [0], [1], [0, 0, 1, 1], [], []>} : vector<8x512xbf16>, vector<512x256xbf16>, vector<8x256xf32> -> vector<8x256xf32>
    %c0_18 = arith.constant 0 : index
    %c0_19 = arith.constant 0 : index
    %22 = vector.load %arg14[%c0_18, %c0_19] : memref<1x256xf32, #tpu.memory_space<vmem>>, vector<1x256xf32>
    %23 = vector.broadcast %22 : vector<1x256xf32> to vector<8x256xf32>
    %24 = arith.addf %21, %23 : vector<8x256xf32>
    %cst_20 = arith.constant 0.000000e+00 : f32
    %25 = vector.broadcast %cst_20 : f32 to vector<8x256xf32>
    %26 = arith.maximumf %24, %25 : vector<8x256xf32>
    %c0_21 = arith.constant 0 : index
    %c0_22 = arith.constant 0 : index
    %27 = vector.load %arg4[%c0_21, %c0_22] : memref<32x8xbf16, #tpu.memory_space<vmem>>, vector<32x8xbf16>
    %28 = arith.truncf %26 : vector<8x256xf32> to vector<8x256xbf16>
    %cst_23 = arith.constant dense<0.000000e+00> : vector<32x256xf32>
    %29 = tpu.matmul %27, %28, %cst_23 {dimension_numbers = #tpu.dot_dimension_numbers<[1], [0], [0], [1], [0, 0, 1, 1], [], []>} : vector<32x8xbf16>, vector<8x256xbf16>, vector<32x256xf32> -> vector<32x256xf32>
    %c0_24 = arith.constant 0 : index
    %c0_25 = arith.constant 0 : index
    %30 = vector.load %arg5[%c0_24, %c0_25] : memref<32x1xf32, #tpu.memory_space<vmem>>, vector<32x1xf32>
    %31 = vector.broadcast %30 : vector<32x1xf32> to vector<32x256xf32>
    %32 = arith.addf %29, %31 : vector<32x256xf32>
    %33 = arith.truncf %32 : vector<32x256xf32> to vector<32x256xbf16>
    %c0_26 = arith.constant 0 : index
    %c0_27 = arith.constant 0 : index
    %34 = vector.load %arg15[%c0_26, %c0_27] : memref<256x128xbf16, #tpu.memory_space<vmem>>, vector<256x128xbf16>
    %cst_28 = arith.constant dense<0.000000e+00> : vector<32x128xf32>
    %35 = tpu.matmul %33, %34, %cst_28 {dimension_numbers = #tpu.dot_dimension_numbers<[1], [0], [0], [1], [0, 0, 1, 1], [], []>} : vector<32x256xbf16>, vector<256x128xbf16>, vector<32x128xf32> -> vector<32x128xf32>
    %c0_29 = arith.constant 0 : index
    %c0_30 = arith.constant 0 : index
    %36 = vector.load %arg16[%c0_29, %c0_30] : memref<1x128xf32, #tpu.memory_space<vmem>>, vector<1x128xf32>
    %37 = vector.broadcast %36 : vector<1x128xf32> to vector<32x128xf32>
    %38 = arith.addf %35, %37 : vector<32x128xf32>
    %cst_31 = arith.constant 0.000000e+00 : f32
    %39 = vector.broadcast %cst_31 : f32 to vector<32x128xf32>
    %40 = arith.maximumf %38, %39 : vector<32x128xf32>
    %c0_32 = arith.constant 0 : index
    %c0_33 = arith.constant 0 : index
    %41 = vector.load %arg9[%c0_32, %c0_33] : memref<32x32xbf16, #tpu.memory_space<vmem>>, vector<32x32xbf16>
    %42 = arith.truncf %40 : vector<32x128xf32> to vector<32x128xbf16>
    %cst_34 = arith.constant dense<0.000000e+00> : vector<32x128xf32>
    %43 = tpu.matmul %41, %42, %cst_34 {dimension_numbers = #tpu.dot_dimension_numbers<[1], [0], [0], [1], [0, 0, 1, 1], [], []>} : vector<32x32xbf16>, vector<32x128xbf16>, vector<32x128xf32> -> vector<32x128xf32>
    %44 = arith.truncf %43 : vector<32x128xf32> to vector<32x128xbf16>
    %c0_35 = arith.constant 0 : index
    %c0_36 = arith.constant 0 : index
    %45 = vector.load %arg17[%c0_35, %c0_36] : memref<128x64xbf16, #tpu.memory_space<vmem>>, vector<128x64xbf16>
    %cst_37 = arith.constant dense<0.000000e+00> : vector<32x64xf32>
    %46 = tpu.matmul %44, %45, %cst_37 {dimension_numbers = #tpu.dot_dimension_numbers<[1], [0], [0], [1], [0, 0, 1, 1], [], []>} : vector<32x128xbf16>, vector<128x64xbf16>, vector<32x64xf32> -> vector<32x64xf32>
    %c0_38 = arith.constant 0 : index
    %c0_39 = arith.constant 0 : index
    %47 = vector.load %arg18[%c0_38, %c0_39] : memref<1x64xf32, #tpu.memory_space<vmem>>, vector<1x64xf32>
    %48 = vector.broadcast %47 : vector<1x64xf32> to vector<32x64xf32>
    %49 = arith.addf %46, %48 : vector<32x64xf32>
    %cst_40 = arith.constant 0.000000e+00 : f32
    %50 = vector.broadcast %cst_40 : f32 to vector<32x64xf32>
    %51 = arith.maximumf %49, %50 : vector<32x64xf32>
    %c0_41 = arith.constant 0 : index
    %c0_42 = arith.constant 0 : index
    %52 = vector.load %arg6[%c0_41, %c0_42] : memref<128x32xbf16, #tpu.memory_space<vmem>>, vector<128x32xbf16>
    %53 = arith.truncf %51 : vector<32x64xf32> to vector<32x64xbf16>
    %cst_43 = arith.constant dense<0.000000e+00> : vector<128x64xf32>
    %54 = tpu.matmul %52, %53, %cst_43 {dimension_numbers = #tpu.dot_dimension_numbers<[1], [0], [0], [1], [0, 0, 1, 1], [], []>} : vector<128x32xbf16>, vector<32x64xbf16>, vector<128x64xf32> -> vector<128x64xf32>
    %c0_44 = arith.constant 0 : index
    %c0_45 = arith.constant 0 : index
    %55 = vector.load %arg7[%c0_44, %c0_45] : memref<128x1xf32, #tpu.memory_space<vmem>>, vector<128x1xf32>
    %56 = vector.broadcast %55 : vector<128x1xf32> to vector<128x64xf32>
    %57 = arith.addf %54, %56 : vector<128x64xf32>
    %58 = arith.truncf %57 : vector<128x64xf32> to vector<128x64xbf16>
    %c0_46 = arith.constant 0 : index
    %c0_47 = arith.constant 0 : index
    %59 = vector.load %arg19[%c0_46, %c0_47] : memref<64x16xbf16, #tpu.memory_space<vmem>>, vector<64x16xbf16>
    %cst_48 = arith.constant dense<0.000000e+00> : vector<128x16xf32>
    %60 = tpu.matmul %58, %59, %cst_48 {dimension_numbers = #tpu.dot_dimension_numbers<[1], [0], [0], [1], [0, 0, 1, 1], [], []>} : vector<128x64xbf16>, vector<64x16xbf16>, vector<128x16xf32> -> vector<128x16xf32>
    %c0_49 = arith.constant 0 : index
    %c0_50 = arith.constant 0 : index
    %61 = vector.load %arg20[%c0_49, %c0_50] : memref<1x16xf32, #tpu.memory_space<vmem>>, vector<1x16xf32>
    %62 = vector.broadcast %61 : vector<1x16xf32> to vector<128x16xf32>
    %63 = arith.addf %60, %62 : vector<128x16xf32>
    %cst_51 = arith.constant 0.000000e+00 : f32
    %64 = vector.broadcast %cst_51 : f32 to vector<128x16xf32>
    %65 = arith.maximumf %63, %64 : vector<128x16xf32>
    %c0_52 = arith.constant 0 : index
    %c0_53 = arith.constant 0 : index
    %66 = vector.load %arg10[%c0_52, %c0_53] : memref<128x128xbf16, #tpu.memory_space<vmem>>, vector<128x128xbf16>
    %67 = arith.truncf %65 : vector<128x16xf32> to vector<128x16xbf16>
    %cst_54 = arith.constant dense<0.000000e+00> : vector<128x16xf32>
    %68 = tpu.matmul %66, %67, %cst_54 {dimension_numbers = #tpu.dot_dimension_numbers<[1], [0], [0], [1], [0, 0, 1, 1], [], []>} : vector<128x128xbf16>, vector<128x16xbf16>, vector<128x16xf32> -> vector<128x16xf32>
    %c0_55 = arith.constant 0 : index
    %c0_56 = arith.constant 0 : index
    %69 = vector.load %arg21[%c0_55, %c0_56] : memref<3x16xf32, #tpu.memory_space<vmem>>, vector<3x16xf32>
    %cst_57 = arith.constant dense<0.000000e+00> : vector<3x128xf32>
    %70 = tpu.matmul %69, %68, %cst_57 {dimension_numbers = #tpu.dot_dimension_numbers<[1], [1], [0], [0], [0, 0, 1, 0], [], []>} : vector<3x16xf32>, vector<128x16xf32>, vector<3x128xf32> -> vector<3x128xf32>
    %c0_58 = arith.constant 0 : index
    %c0_59 = arith.constant 0 : index
    %71 = vector.load %arg22[%c0_58, %c0_59] : memref<3x1xf32, #tpu.memory_space<vmem>>, vector<3x1xf32>
    %72 = vector.broadcast %71 : vector<3x1xf32> to vector<3x128xf32>
    %73 = arith.addf %70, %72 : vector<3x128xf32>
    %c0_60 = arith.constant 0 : index
    %c0_61 = arith.constant 0 : index
    %c0_62 = arith.constant 0 : index
    %74 = vector.load %arg23[%c0_60, %c0_61, %c0_62] : memref<2x3x128xf32, #tpu.memory_space<vmem>>, vector<1x3x128xf32>
    %75 = vector.shape_cast %74 : vector<1x3x128xf32> to vector<3x128xf32>
    %76 = vector.shape_cast %73 : vector<3x128xf32> to vector<1x3x128xf32>
    tpu.vector_store %arg23[%c0_60, %c0_61, %c0_62], %76 {strides = array<i32>} : memref<2x3x128xf32, #tpu.memory_space<vmem>>, vector<1x3x128xf32>,
    %c1 = arith.constant 1 : index
    %c0_63 = arith.constant 0 : index
    %c0_64 = arith.constant 0 : index
    %77 = vector.load %arg1[%c1, %c0_63, %c0_64] : memref<2x50x3xf32, #tpu.memory_space<vmem>>, vector<1x50x3xf32>
    %78 = vector.shape_cast %77 : vector<1x50x3xf32> to vector<50x3xf32>
    %c0_65 = arith.constant 0 : index
    %c0_66 = arith.constant 0 : index
    %79 = vector.load %arg2[%c0_65, %c0_66] : memref<8x50xbf16, #tpu.memory_space<vmem>>, vector<8x50xbf16>
    %80 = arith.truncf %78 : vector<50x3xf32> to vector<50x3xbf16>
    %cst_67 = arith.constant dense<0.000000e+00> : vector<8x3xf32>
    %81 = tpu.matmul %79, %80, %cst_67 {dimension_numbers = #tpu.dot_dimension_numbers<[1], [0], [0], [1], [0, 0, 1, 1], [], []>} : vector<8x50xbf16>, vector<50x3xbf16>, vector<8x3xf32> -> vector<8x3xf32>
    %c0_68 = arith.constant 0 : index
    %c0_69 = arith.constant 0 : index
    %82 = vector.load %arg3[%c0_68, %c0_69] : memref<8x1xf32, #tpu.memory_space<vmem>>, vector<8x1xf32>
    %83 = vector.broadcast %82 : vector<8x1xf32> to vector<8x3xf32>
    %84 = arith.addf %81, %83 : vector<8x3xf32>
    %85 = arith.truncf %84 : vector<8x3xf32> to vector<8x3xbf16>
    %c0_70 = arith.constant 0 : index
    %c0_71 = arith.constant 0 : index
    %86 = vector.load %arg11[%c0_70, %c0_71] : memref<3x512xbf16, #tpu.memory_space<vmem>>, vector<3x512xbf16>
    %cst_72 = arith.constant dense<0.000000e+00> : vector<8x512xf32>
    %87 = tpu.matmul %85, %86, %cst_72 {dimension_numbers = #tpu.dot_dimension_numbers<[1], [0], [0], [1], [0, 0, 1, 1], [], []>} : vector<8x3xbf16>, vector<3x512xbf16>, vector<8x512xf32> -> vector<8x512xf32>
    %c0_73 = arith.constant 0 : index
    %c0_74 = arith.constant 0 : index
    %88 = vector.load %arg12[%c0_73, %c0_74] : memref<1x512xf32, #tpu.memory_space<vmem>>, vector<1x512xf32>
    %89 = vector.broadcast %88 : vector<1x512xf32> to vector<8x512xf32>
    %90 = arith.addf %87, %89 : vector<8x512xf32>
    %cst_75 = arith.constant 0.000000e+00 : f32
    %91 = vector.broadcast %cst_75 : f32 to vector<8x512xf32>
    %92 = arith.maximumf %90, %91 : vector<8x512xf32>
    %c0_76 = arith.constant 0 : index
    %c0_77 = arith.constant 0 : index
    %93 = vector.load %arg8[%c0_76, %c0_77] : memref<8x8xbf16, #tpu.memory_space<vmem>>, vector<8x8xbf16>
    %94 = arith.truncf %92 : vector<8x512xf32> to vector<8x512xbf16>
    %cst_78 = arith.constant dense<0.000000e+00> : vector<8x512xf32>
    %95 = tpu.matmul %93, %94, %cst_78 {dimension_numbers = #tpu.dot_dimension_numbers<[1], [0], [0], [1], [0, 0, 1, 1], [], []>} : vector<8x8xbf16>, vector<8x512xbf16>, vector<8x512xf32> -> vector<8x512xf32>
    %96 = arith.truncf %95 : vector<8x512xf32> to vector<8x512xbf16>
    %c0_79 = arith.constant 0 : index
    %c0_80 = arith.constant 0 : index
    %97 = vector.load %arg13[%c0_79, %c0_80] : memref<512x256xbf16, #tpu.memory_space<vmem>>, vector<512x256xbf16>
    %cst_81 = arith.constant dense<0.000000e+00> : vector<8x256xf32>
    %98 = tpu.matmul %96, %97, %cst_81 {dimension_numbers = #tpu.dot_dimension_numbers<[1], [0], [0], [1], [0, 0, 1, 1], [], []>} : vector<8x512xbf16>, vector<512x256xbf16>, vector<8x256xf32> -> vector<8x256xf32>
    %c0_82 = arith.constant 0 : index
    %c0_83 = arith.constant 0 : index
    %99 = vector.load %arg14[%c0_82, %c0_83] : memref<1x256xf32, #tpu.memory_space<vmem>>, vector<1x256xf32>
    %100 = vector.broadcast %99 : vector<1x256xf32> to vector<8x256xf32>
    %101 = arith.addf %98, %100 : vector<8x256xf32>
    %cst_84 = arith.constant 0.000000e+00 : f32
    %102 = vector.broadcast %cst_84 : f32 to vector<8x256xf32>
    %103 = arith.maximumf %101, %102 : vector<8x256xf32>
    %c0_85 = arith.constant 0 : index
    %c0_86 = arith.constant 0 : index
    %104 = vector.load %arg4[%c0_85, %c0_86] : memref<32x8xbf16, #tpu.memory_space<vmem>>, vector<32x8xbf16>
    %105 = arith.truncf %103 : vector<8x256xf32> to vector<8x256xbf16>
    %cst_87 = arith.constant dense<0.000000e+00> : vector<32x256xf32>
    %106 = tpu.matmul %104, %105, %cst_87 {dimension_numbers = #tpu.dot_dimension_numbers<[1], [0], [0], [1], [0, 0, 1, 1], [], []>} : vector<32x8xbf16>, vector<8x256xbf16>, vector<32x256xf32> -> vector<32x256xf32>
    %c0_88 = arith.constant 0 : index
    %c0_89 = arith.constant 0 : index
    %107 = vector.load %arg5[%c0_88, %c0_89] : memref<32x1xf32, #tpu.memory_space<vmem>>, vector<32x1xf32>
    %108 = vector.broadcast %107 : vector<32x1xf32> to vector<32x256xf32>
    %109 = arith.addf %106, %108 : vector<32x256xf32>
    %110 = arith.truncf %109 : vector<32x256xf32> to vector<32x256xbf16>
    %c0_90 = arith.constant 0 : index
    %c0_91 = arith.constant 0 : index
    %111 = vector.load %arg15[%c0_90, %c0_91] : memref<256x128xbf16, #tpu.memory_space<vmem>>, vector<256x128xbf16>
    %cst_92 = arith.constant dense<0.000000e+00> : vector<32x128xf32>
    %112 = tpu.matmul %110, %111, %cst_92 {dimension_numbers = #tpu.dot_dimension_numbers<[1], [0], [0], [1], [0, 0, 1, 1], [], []>} : vector<32x256xbf16>, vector<256x128xbf16>, vector<32x128xf32> -> vector<32x128xf32>
    %c0_93 = arith.constant 0 : index
    %c0_94 = arith.constant 0 : index
    %113 = vector.load %arg16[%c0_93, %c0_94] : memref<1x128xf32, #tpu.memory_space<vmem>>, vector<1x128xf32>
    %114 = vector.broadcast %113 : vector<1x128xf32> to vector<32x128xf32>
    %115 = arith.addf %112, %114 : vector<32x128xf32>
    %cst_95 = arith.constant 0.000000e+00 : f32
    %116 = vector.broadcast %cst_95 : f32 to vector<32x128xf32>
    %117 = arith.maximumf %115, %116 : vector<32x128xf32>
    %c0_96 = arith.constant 0 : index
    %c0_97 = arith.constant 0 : index
    %118 = vector.load %arg9[%c0_96, %c0_97] : memref<32x32xbf16, #tpu.memory_space<vmem>>, vector<32x32xbf16>
    %119 = arith.truncf %117 : vector<32x128xf32> to vector<32x128xbf16>
    %cst_98 = arith.constant dense<0.000000e+00> : vector<32x128xf32>
    %120 = tpu.matmul %118, %119, %cst_98 {dimension_numbers = #tpu.dot_dimension_numbers<[1], [0], [0], [1], [0, 0, 1, 1], [], []>} : vector<32x32xbf16>, vector<32x128xbf16>, vector<32x128xf32> -> vector<32x128xf32>
    %121 = arith.truncf %120 : vector<32x128xf32> to vector<32x128xbf16>
    %c0_99 = arith.constant 0 : index
    %c0_100 = arith.constant 0 : index
    %122 = vector.load %arg17[%c0_99, %c0_100] : memref<128x64xbf16, #tpu.memory_space<vmem>>, vector<128x64xbf16>
    %cst_101 = arith.constant dense<0.000000e+00> : vector<32x64xf32>
    %123 = tpu.matmul %121, %122, %cst_101 {dimension_numbers = #tpu.dot_dimension_numbers<[1], [0], [0], [1], [0, 0, 1, 1], [], []>} : vector<32x128xbf16>, vector<128x64xbf16>, vector<32x64xf32> -> vector<32x64xf32>
    %c0_102 = arith.constant 0 : index
    %c0_103 = arith.constant 0 : index
    %124 = vector.load %arg18[%c0_102, %c0_103] : memref<1x64xf32, #tpu.memory_space<vmem>>, vector<1x64xf32>
    %125 = vector.broadcast %124 : vector<1x64xf32> to vector<32x64xf32>
    %126 = arith.addf %123, %125 : vector<32x64xf32>
    %cst_104 = arith.constant 0.000000e+00 : f32
    %127 = vector.broadcast %cst_104 : f32 to vector<32x64xf32>
    %128 = arith.maximumf %126, %127 : vector<32x64xf32>
    %c0_105 = arith.constant 0 : index
    %c0_106 = arith.constant 0 : index
    %129 = vector.load %arg6[%c0_105, %c0_106] : memref<128x32xbf16, #tpu.memory_space<vmem>>, vector<128x32xbf16>
    %130 = arith.truncf %128 : vector<32x64xf32> to vector<32x64xbf16>
    %cst_107 = arith.constant dense<0.000000e+00> : vector<128x64xf32>
    %131 = tpu.matmul %129, %130, %cst_107 {dimension_numbers = #tpu.dot_dimension_numbers<[1], [0], [0], [1], [0, 0, 1, 1], [], []>} : vector<128x32xbf16>, vector<32x64xbf16>, vector<128x64xf32> -> vector<128x64xf32>
    %c0_108 = arith.constant 0 : index
    %c0_109 = arith.constant 0 : index
    %132 = vector.load %arg7[%c0_108, %c0_109] : memref<128x1xf32, #tpu.memory_space<vmem>>, vector<128x1xf32>
    %133 = vector.broadcast %132 : vector<128x1xf32> to vector<128x64xf32>
    %134 = arith.addf %131, %133 : vector<128x64xf32>
    %135 = arith.truncf %134 : vector<128x64xf32> to vector<128x64xbf16>
    %c0_110 = arith.constant 0 : index
    %c0_111 = arith.constant 0 : index
    %136 = vector.load %arg19[%c0_110, %c0_111] : memref<64x16xbf16, #tpu.memory_space<vmem>>, vector<64x16xbf16>
    %cst_112 = arith.constant dense<0.000000e+00> : vector<128x16xf32>
    %137 = tpu.matmul %135, %136, %cst_112 {dimension_numbers = #tpu.dot_dimension_numbers<[1], [0], [0], [1], [0, 0, 1, 1], [], []>} : vector<128x64xbf16>, vector<64x16xbf16>, vector<128x16xf32> -> vector<128x16xf32>
    %c0_113 = arith.constant 0 : index
    %c0_114 = arith.constant 0 : index
    %138 = vector.load %arg20[%c0_113, %c0_114] : memref<1x16xf32, #tpu.memory_space<vmem>>, vector<1x16xf32>
    %139 = vector.broadcast %138 : vector<1x16xf32> to vector<128x16xf32>
    %140 = arith.addf %137, %139 : vector<128x16xf32>
    %cst_115 = arith.constant 0.000000e+00 : f32
    %141 = vector.broadcast %cst_115 : f32 to vector<128x16xf32>
    %142 = arith.maximumf %140, %141 : vector<128x16xf32>
    %c0_116 = arith.constant 0 : index
    %c0_117 = arith.constant 0 : index
    %143 = vector.load %arg10[%c0_116, %c0_117] : memref<128x128xbf16, #tpu.memory_space<vmem>>, vector<128x128xbf16>
    %144 = arith.truncf %142 : vector<128x16xf32> to vector<128x16xbf16>
    %cst_118 = arith.constant dense<0.000000e+00> : vector<128x16xf32>
    %145 = tpu.matmul %143, %144, %cst_118 {dimension_numbers = #tpu.dot_dimension_numbers<[1], [0], [0], [1], [0, 0, 1, 1], [], []>} : vector<128x128xbf16>, vector<128x16xbf16>, vector<128x16xf32> -> vector<128x16xf32>
    %c0_119 = arith.constant 0 : index
    %c0_120 = arith.constant 0 : index
    %146 = vector.load %arg21[%c0_119, %c0_120] : memref<3x16xf32, #tpu.memory_space<vmem>>, vector<3x16xf32>
    %cst_121 = arith.constant dense<0.000000e+00> : vector<3x128xf32>
    %147 = tpu.matmul %146, %145, %cst_121 {dimension_numbers = #tpu.dot_dimension_numbers<[1], [1], [0], [0], [0, 0, 1, 0], [], []>} : vector<3x16xf32>, vector<128x16xf32>, vector<3x128xf32> -> vector<3x128xf32>
    %c0_122 = arith.constant 0 : index
    %c0_123 = arith.constant 0 : index
    %148 = vector.load %arg22[%c0_122, %c0_123] : memref<3x1xf32, #tpu.memory_space<vmem>>, vector<3x1xf32>
    %149 = vector.broadcast %148 : vector<3x1xf32> to vector<3x128xf32>
    %150 = arith.addf %147, %149 : vector<3x128xf32>
    %c1_124 = arith.constant 1 : index
    %c0_125 = arith.constant 0 : index
    %c0_126 = arith.constant 0 : index
    %151 = vector.load %arg23[%c1_124, %c0_125, %c0_126] : memref<2x3x128xf32, #tpu.memory_space<vmem>>, vector<1x3x128xf32>
    %152 = vector.shape_cast %151 : vector<1x3x128xf32> to vector<3x128xf32>
    %153 = vector.shape_cast %150 : vector<3x128xf32> to vector<1x3x128xf32>
    tpu.vector_store %arg23[%c1_124, %c0_125, %c0_126], %153 {strides = array<i32>} : memref<2x3x128xf32, #tpu.memory_space<vmem>>, vector<1x3x128xf32>,
    return
  }
  func.func @transform_0(%arg0: i32) -> (i32, i32, i32) {
    %c0_i32 = arith.constant 0 : i32
    %c0_i32_0 = arith.constant 0 : i32
    %c0_i32_1 = arith.constant 0 : i32
    %c0_i32_2 = arith.constant 0 : i32
    return %c0_i32, %c0_i32_0, %c0_i32_1 : i32, i32, i32
  }
  func.func @transform_1(%arg0: i32) -> (i32, i32) {
    %c0_i32 = arith.constant 0 : i32
    %c0_i32_0 = arith.constant 0 : i32
    %c0_i32_1 = arith.constant 0 : i32
    return %c0_i32, %c0_i32_0 : i32, i32
  }
  func.func @transform_2(%arg0: i32) -> (i32, i32) {
    %c0_i32 = arith.constant 0 : i32
    %c0_i32_0 = arith.constant 0 : i32
    %c0_i32_1 = arith.constant 0 : i32
    return %c0_i32, %c0_i32_0 : i32, i32
  }
  func.func @transform_3(%arg0: i32) -> (i32, i32) {
    %c0_i32 = arith.constant 0 : i32
    %c0_i32_0 = arith.constant 0 : i32
    %c0_i32_1 = arith.constant 0 : i32
    return %c0_i32, %c0_i32_0 : i32, i32
  }
  func.func @transform_4(%arg0: i32) -> (i32, i32) {
    %c0_i32 = arith.constant 0 : i32
    %c0_i32_0 = arith.constant 0 : i32
    %c0_i32_1 = arith.constant 0 : i32
    return %c0_i32, %c0_i32_0 : i32, i32
  }
  func.func @transform_5(%arg0: i32) -> (i32, i32) {
    %c0_i32 = arith.constant 0 : i32
    %c0_i32_0 = arith.constant 0 : i32
    %c0_i32_1 = arith.constant 0 : i32
    return %c0_i32, %c0_i32_0 : i32, i32
  }
  func.func @transform_6(%arg0: i32) -> (i32, i32) {
    %c0_i32 = arith.constant 0 : i32
    %c0_i32_0 = arith.constant 0 : i32
    %c0_i32_1 = arith.constant 0 : i32
    return %c0_i32, %c0_i32_0 : i32, i32
  }
  func.func @transform_7(%arg0: i32) -> (i32, i32) {
    %c0_i32 = arith.constant 0 : i32
    %c0_i32_0 = arith.constant 0 : i32
    %c0_i32_1 = arith.constant 0 : i32
    return %c0_i32, %c0_i32_0 : i32, i32
  }
  func.func @transform_8(%arg0: i32) -> (i32, i32) {
    %c0_i32 = arith.constant 0 : i32
    %c0_i32_0 = arith.constant 0 : i32
    %c0_i32_1 = arith.constant 0 : i32
    return %c0_i32, %c0_i32_0 : i32, i32
  }
  func.func @transform_9(%arg0: i32) -> (i32, i32) {
    %c0_i32 = arith.constant 0 : i32
    %c0_i32_0 = arith.constant 0 : i32
    %c0_i32_1 = arith.constant 0 : i32
    return %c0_i32, %c0_i32_0 : i32, i32
  }
  func.func @transform_10(%arg0: i32) -> (i32, i32) {
    %c0_i32 = arith.constant 0 : i32
    %c0_i32_0 = arith.constant 0 : i32
    %c0_i32_1 = arith.constant 0 : i32
    return %c0_i32, %c0_i32_0 : i32, i32
  }
  func.func @transform_11(%arg0: i32) -> (i32, i32) {
    %c0_i32 = arith.constant 0 : i32
    %c0_i32_0 = arith.constant 0 : i32
    %c0_i32_1 = arith.constant 0 : i32
    return %c0_i32, %c0_i32_0 : i32, i32
  }
  func.func @transform_12(%arg0: i32) -> (i32, i32) {
    %c0_i32 = arith.constant 0 : i32
    %c0_i32_0 = arith.constant 0 : i32
    %c0_i32_1 = arith.constant 0 : i32
    return %c0_i32, %c0_i32_0 : i32, i32
  }
  func.func @transform_13(%arg0: i32) -> (i32, i32) {
    %c0_i32 = arith.constant 0 : i32
    %c0_i32_0 = arith.constant 0 : i32
    %c0_i32_1 = arith.constant 0 : i32
    return %c0_i32, %c0_i32_0 : i32, i32
  }
  func.func @transform_14(%arg0: i32) -> (i32, i32) {
    %c0_i32 = arith.constant 0 : i32
    %c0_i32_0 = arith.constant 0 : i32
    %c0_i32_1 = arith.constant 0 : i32
    return %c0_i32, %c0_i32_0 : i32, i32
  }
  func.func @transform_15(%arg0: i32) -> (i32, i32) {
    %c0_i32 = arith.constant 0 : i32
    %c0_i32_0 = arith.constant 0 : i32
    %c0_i32_1 = arith.constant 0 : i32
    return %c0_i32, %c0_i32_0 : i32, i32
  }
  func.func @transform_16(%arg0: i32) -> (i32, i32) {
    %c0_i32 = arith.constant 0 : i32
    %c0_i32_0 = arith.constant 0 : i32
    %c0_i32_1 = arith.constant 0 : i32
    return %c0_i32, %c0_i32_0 : i32, i32
  }
  func.func @transform_17(%arg0: i32) -> (i32, i32) {
    %c0_i32 = arith.constant 0 : i32
    %c0_i32_0 = arith.constant 0 : i32
    %c0_i32_1 = arith.constant 0 : i32
    return %c0_i32, %c0_i32_0 : i32, i32
  }
  func.func @transform_18(%arg0: i32) -> (i32, i32) {
    %c0_i32 = arith.constant 0 : i32
    %c0_i32_0 = arith.constant 0 : i32
    %c0_i32_1 = arith.constant 0 : i32
    return %c0_i32, %c0_i32_0 : i32, i32
  }
  func.func @transform_19(%arg0: i32) -> (i32, i32) {
    %c0_i32 = arith.constant 0 : i32
    %c0_i32_0 = arith.constant 0 : i32
    %c0_i32_1 = arith.constant 0 : i32
    return %c0_i32, %c0_i32_0 : i32, i32
  }
  func.func @transform_20(%arg0: i32) -> (i32, i32) {
    %c0_i32 = arith.constant 0 : i32
    %c0_i32_0 = arith.constant 0 : i32
    %c0_i32_1 = arith.constant 0 : i32
    return %c0_i32, %c0_i32_0 : i32, i32
  }
  func.func @transform_21(%arg0: i32) -> (i32, i32) {
    %c0_i32 = arith.constant 0 : i32
    %c0_i32_0 = arith.constant 0 : i32
    %c0_i32_1 = arith.constant 0 : i32
    return %c0_i32, %c0_i32_0 : i32, i32
  }
  func.func @transform_22(%arg0: i32) -> (i32, i32, i32) {
    %c0_i32 = arith.constant 0 : i32
    %c0_i32_0 = arith.constant 0 : i32
    %c0_i32_1 = arith.constant 0 : i32
    %c0_i32_2 = arith.constant 0 : i32
    return %c0_i32, %c0_i32_0, %c0_i32_1 : i32, i32, i32
  }
}

</mosaic_0001>

<bundles_post_ra>
// kernel: meshgen_forward.1
= control target key start
LH: loop header
LB: loop body
LE: loop exit
PB: predicated region body
PF: predicated region fallthrough
CT: control target
= control target key end

     0   :  { %v5386_v0 = vmov 0.0   ;;  %vm5387_vm0 = vmmov 0   ;;  %v5388_v6 = vmov 0   ;;  %vm94_vm1 = vcmask 1040384   ;;  %s6660_s0 = inlined_call_operand.vmem [shape: f32[2,50,3], index: 0, kind: input, shape index: {}]   ;;  %s6661_s2 = inlined_call_operand.vmem [shape: f32[8,1], index: 2, kind: input, shape index: {}]   ;;  %s6662_s4 = inlined_call_operand.vmem [shape: f32[32,1], index: 4, kind: input, shape index: {}]   ;;  %s6663_s6 = inlined_call_operand.vmem [shape: f32[128,1], index: 6, kind: input, shape index: {}]   ;;  %s6664_s1 = inlined_call_operand.vmem [shape: bf16[8,50], index: 1, kind: input, shape index: {}]   ;;  %s6665_s21 = inlined_call_operand.vmem [shape: f32[3,1], index: 21, kind: input, shape index: {}]   ;;  %s6666_s10 = inlined_call_operand.vmem [shape: bf16[3,512], index: 10, kind: input, shape index: {}]   ;;  %s6667_s12 = inlined_call_operand.vmem [shape: bf16[512,256], index: 12, kind: input, shape index: {}]   ;;  %s6668_s11 = inlined_call_operand.vmem [shape: f32[1,512], index: 11, kind: input, shape index: {}]   ;;  %s6669_s7 = inlined_call_operand.vmem [shape: bf16[8,8], index: 7, kind: input, shape index: {}]   ;;  %s6670_s3 = inlined_call_operand.vmem [shape: bf16[32,8], index: 3, kind: input, shape index: {}]   ;;  %s6671_s14 = inlined_call_operand.vmem [shape: bf16[256,128], index: 14, kind: input, shape index: {}]   ;;  %s6672_s13 = inlined_call_operand.vmem [shape: f32[1,256], index: 13, kind: input, shape index: {}]   ;;  %s6673_s8 = inlined_call_operand.vmem [shape: bf16[32,32], index: 8, kind: input, shape index: {}]   ;;  %s6674_s16 = inlined_call_operand.vmem [shape: bf16[128,64], index: 16, kind: input, shape index: {}]   ;;  %s6675_s15 = inlined_call_operand.vmem [shape: f32[1,128], index: 15, kind: input, shape index: {}]   ;;  %s6676_s5 = inlined_call_operand.vmem [shape: bf16[128,32], index: 5, kind: input, shape index: {}]   ;;  %s6677_s18 = inlined_call_operand.vmem [shape: bf16[64,16], index: 18, kind: input, shape index: {}]   ;;  %s6678_s17 = inlined_call_operand.vmem [shape: f32[1,64], index: 17, kind: input, shape index: {}]   ;;  %s6679_s9 = inlined_call_operand.vmem [shape: bf16[128,128], index: 9, kind: input, shape index: {}]   ;;  %s6680_s19 = inlined_call_operand.vmem [shape: f32[1,16], index: 19, kind: input, shape index: {}]   ;;  %s6681_s20 = inlined_call_operand.vmem [shape: f32[3,16], index: 20, kind: input, shape index: {}]   ;;  %s6682_s22 = inlined_call_operand.vmem [shape: f32[2,3,128], index: 22, kind: output, shape index: {}]  }
   0x1   :  { %6689 = sst [smem:[#allocation2_spill]] %s6660_s0  ;;  %4709 = vmatprep.subr.bf16.mxu0 %v5386_v0  ;;  %4717 = vmatprep.mubr.msk.bf16.mxu0 %vm5387_vm0, %v5386_v0  ;;  %vm90_vm2 = vcmask 408576   ;;  %v142_v36 = vlaneseq  ;;  %v5389_v37 = vmov 1983009808   ;;  %vm184_vm3 = vcmask 1041408  }
   0x2   :  { %6690 = sst [smem:[#allocation3_spill]] %s6661_s2  ;;  %s6696_s29 = sld [smem:[#allocation2_spill]]  ;;  %5093 = vset.pattern.permute.xlu0 %v5388_v6  ;;  %231 = vmatprep.mubr.bf16.mxu1 %v5388_v6  ;;  %v165_v38 = vunpack.c.l.s4 %v5389_v37  ;;  %v5390_v41 = vmov 65535   ;;  %vm180_vm4 = vcmask 23552   ;;  %v140_v63 = vld [vmem:[%s6668_s11] sm:$0xf] }
   0x3   :  { %6691 = sst [smem:[#allocation4_spill]] %s6662_s4  ;;  %s6697_s25 = sld [smem:[#allocation3_spill]]  ;;  %5094 = vset.pattern.permute.xlu1 %v5388_v6  ;;  %v5663_v39 = vshrl.u32 %v142_v36, 7  ;;  %v185_v42 = vsel %vm94_vm1, 4294967295, %v5390_v41  ;;  %vm294_vm5 = vcmask 1043456   ;;  %vm290_vm6 = vcmask 64512  }
   0x4   :  { %6692 = sst [smem:[#allocation5_spill]] %s6663_s6  ;;  %v166_v40 = vunpack.c.0.s8 %v165_v38  ;;  %v5670_v46 = vsel %vm184_vm3, %v185_v42, 0  ;;  %v5098_v38 = vld [vmem:[%s6667_s12 + $0x4] ss:$8 sps:$4 sm:$0xff]   ;;  %vm1186_vm7 = vcmask 261120   ;;  %vm1690_vm8 = vcmask 523264  }
   0x5   :  { %6693 = sst [smem:[#allocation6_spill]] %s6664_s1  ;;  %s6698_s1 = sld [smem:[#allocation4_spill]]  ;;  %v5687_v62 = vsub.s32 0, %v5663_v39  ;;  %vm2004_vm9 = vcmask 130048  }
   0x6   :  { %6694 = sst [smem:[#allocation7_spill]] %s6665_s21  ;;  %s6700_s27 = sld [smem:[#allocation6_spill]]  ;;  %v169_v43 = vsub.s32 %v166_v40, %v5663_v39  ;;  %vm6155_vm10 = vmpackc.low %vm2004_vm9, %vm2004_vm9 }
   0x7   :  { %6695 = sst [smem:[#allocation8_spill]] %s6666_s10  ;;  %s6701_s28 = sld [smem:[#allocation7_spill]] }
   0x8   :  { %v72_v1 = vld [vmem:[%s6696_s29] sm:$0xff]  ;;  %v73_v2 = vld [vmem:[%s6696_s29 + $0x8] sm:$0xff]  ;;  %v74_v3 = vld [vmem:[%s6696_s29 + $0x10] sm:$0xff]  ;;  %s6702_s0 = sld [smem:[#allocation8_spill]] }
   0x9   :  { %v80_v4 = vpack.c.bf16 %v73_v2, %v72_v1  ;;  %v75_v5 = vld [vmem:[%s6696_s29 + $0x18] sm:$0xff]  ;;  %v5526_v7 = vld [vmem:[%s6697_s25] sm:$0xff]  ;;  %v77_v10 = vld [vmem:[%s6696_s29 + $0x28] sm:$0xff]  ;;  %s6699_s25 = sld [smem:[#allocation5_spill]]  ;;  %v5693_v1 = vsub.s32 1, %v5663_v39  ;;  %v145_v2 = vrot.slane %v140_v63, %v5687_v62 }
   0xa   :  { %v81_v8 = vpack.c.bf16 %v75_v5, %v74_v3  ;;  %87 = vperm.xlu0 %5093, %v5526_v7   ;;  %v76_v9 = vld [vmem:[%s6696_s29 + $0x20] sm:$0xff]  ;;  %v78_v12 = vld [vmem:[%s6696_s29 + $0x30] sm:$0x3] }
   0xb   :  { %4710 = vmatpush3.bf16.msra.mxu0 %v80_v4  ;;  %v879_v11 = vld [vmem:[%s6698_s1] sm:$0xff]  ;;  %v82_v13 = vpack.c.bf16 %v77_v10, %v76_v9  ;;  %v83_v14 = vpack.c.bf16 %v78_v12, %v78_v12  ;;  %v5548_v15 = vld [vmem:[%s6698_s1 + $0x18] sm:$0xff]  ;;  %v5609_v26 = vld [vmem:[%s6698_s1 + $0x10] sm:$0xff]  ;;  %v149_v3 = vrot.slane %v140_v63, %v5693_v1  ;;  %v152_v9 = vsub.s32 2, %v5663_v39 }
   0xc   :  { %4711 = vmatprep.subr.bf16.mxu0 %v5386_v0  ;;  %v79_v18 = vld [vmem:[%s6700_s27] sm:$0xf]  ;;  %v156_v12 = vsub.s32 3, %v5663_v39 }
   0xd   :  { %v96_v16 = vsel %vm94_vm1, %v83_v14, 0  ;;  %v1998_v35 = vld [vmem:[%s6701_s28] sm:$0x7] }
   0xe   :  { %885 = vperm.xlu0 %5093, %v879_v11   ;;  %v139_v44 = vld [vmem:[%s6702_s0] sm:$0xff]  ;;  %v157_v37 = vrot.slane %v140_v63, %v156_v12 }
   0xf   :  { %4712 = vmatpush3.bf16.msra.mxu0 %v81_v8  ;;  %v5556_v17 = vld [vmem:[%s6699_s25 + $0x8] sm:$0xff]  ;;  %v5565_v19 = vld [vmem:[%s6699_s25 + $0x18] sm:$0xff]  ;;  %v5615_v27 = vld [vmem:[%s6699_s25] sm:$0xff]  ;;  %v170_v45 = vrot.slane %v139_v44, %v169_v43  ;;  %v163_v50 = vcombine.high %v139_v44, %v139_v44 }
  0x10   :  { %4713 = vmatprep.subr.bf16.mxu0 %v5386_v0  ;;  %v5573_v20 = vld [vmem:[%s6699_s25 + $0x28] sm:$0xff]  ;;  %v5579_v21 = vld [vmem:[%s6699_s25 + $0x38] sm:$0xff]  ;;  %v5621_v28 = vld [vmem:[%s6699_s25 + $0x10] sm:$0xff] }
  0x11   :  { %v5585_v22 = vld [vmem:[%s6699_s25 + $0x48] sm:$0xff]  ;;  %v5591_v23 = vld [vmem:[%s6699_s25 + $0x58] sm:$0xff]  ;;  %v5627_v29 = vld [vmem:[%s6699_s25 + $0x20] sm:$0xff]  ;;  %v178_v47 = vcombine.high %v170_v45, %v170_v45  ;;  %v188_v49 = vand.u32 %v5670_v46, %v170_v45  ;;  %v177_v51 = vrot.slane %v163_v50, %v169_v43 }
  0x12   :  { %900 = vperm.xlu0 %5093, %v5548_v15   ;;  %v5597_v24 = vld [vmem:[%s6699_s25 + $0x68] sm:$0xff]  ;;  %v5603_v25 = vld [vmem:[%s6699_s25 + $0x78] sm:$0xff]  ;;  %v5633_v30 = vld [vmem:[%s6699_s25 + $0x30] sm:$0xff] }
  0x13   :  { %4714 = vmatpush3.bf16.msra.mxu0 %v82_v13  ;;  %v5639_v31 = vld [vmem:[%s6699_s25 + $0x40] sm:$0xff]  ;;  %v5645_v32 = vld [vmem:[%s6699_s25 + $0x50] sm:$0xff]  ;;  %v191_v48 = vand.u32 %v5670_v46, %v178_v47  ;;  %v179_v52 = vcombine.high %v177_v51, %v177_v51  ;;  %v5679_v59 = vand.u32 %v5670_v46, %v177_v51 }
  0x14   :  { %4715 = vmatprep.subr.bf16.mxu0 %v5386_v0  ;;  %v5651_v33 = vld [vmem:[%s6699_s25 + $0x60] sm:$0xff]  ;;  %v5657_v34 = vld [vmem:[%s6699_s25 + $0x70] sm:$0xff] }
  0x15   :  { %199 = vmatprep.subr.bf16.mxu1 %v191_v48  ;;  %v5675_v53 = vand.u32 %v5670_v46, %v179_v52  ;;  %v285_v44 = vld [vmem:[%s6669_s7] sm:$0xf] }
  0x16   :  { %1409 = vperm.xlu0 %5093, %v5556_v17   ;;  %200 = vmatpush1.bf16.msra.mxu1 %v188_v49  ;;  %v5096_v45 = vld [vmem:[%s6667_s12] ss:$8 sps:$4 sm:$0xff]   ;;  %v5101_v49 = vld [vmem:[%s6667_s12 + $0x14] ss:$8 sps:$4 sm:$0xff]  }
  0x17   :  { %4716 = vmatpush3.bf16.msra.mxu0 %v96_v16  ;;  %240 = vmatprep.subr.bf16.mxu1 %v5675_v53  ;;  %v2335_v39 = vld [vmem:[%s6669_s7] sm:$0xf] }
  0x1a   :  { %4718 = vmatmul.mubr.msk.bf16.vlgmr.msra.gmra.mrb[0].mxu0 %vm90_vm2, %v79_v18  ;;  %1419 = vperm.xlu0 %5093, %v5565_v19  }
  0x1b   :  { %380 = vmatprep.mubr.bf16.mxu0 %v5388_v6 }
  0x1e   :  { %1429 = vperm.xlu0 %5093, %v5573_v20  }
  0x22   :  { %1439 = vperm.xlu0 %5093, %v5579_v21  }
  0x26   :  { %1449 = vperm.xlu0 %5093, %v5585_v22  }
  0x2a   :  { %1459 = vperm.xlu0 %5093, %v5591_v23  }
  0x2e   :  { %1469 = vperm.xlu0 %5093, %v5597_v24  }
  0x32   :  { %1479 = vperm.xlu0 %5093, %v5603_v25  }
  0x36   :  { %2933 = vperm.xlu0 %5093, %v879_v11  }
  0x3a   :  { %2943 = vperm.xlu0 %5093, %v5609_v26  }
  0x3e   :  { %3451 = vperm.xlu0 %5093, %v5615_v27  }
  0x42   :  { %3461 = vperm.xlu0 %5093, %v5621_v28  }
  0x46   :  { %3471 = vperm.xlu0 %5093, %v5627_v29  }
  0x4a   :  { %3481 = vperm.xlu0 %5093, %v5633_v30  }
  0x4e   :  { %3491 = vperm.xlu0 %5093, %v5639_v31  }
  0x52   :  { %3501 = vperm.xlu0 %5093, %v5645_v32  }
  0x56   :  { %3511 = vperm.xlu0 %5093, %v5651_v33  }
  0x5a   :  { %3521 = vperm.xlu0 %5093, %v5657_v34  }
  0x5e   :  { %2001 = vperm.xlu0 %5093, %v1998_v35   ;;  %v153_v35 = vrot.slane %v140_v63, %v152_v9  ;;  %v5105_v63 = vld [vmem:[%s6667_s12 + $0x30] ss:$8 sps:$4 sm:$0xff]  }
  0x89   :  { %v88_v54 = vpop.permute.xlu0 %87 }
  0xed   :  { %v132_v55 = vpop.f32.mrb[0].mxu0 }
  0xee   :  { %v133_v56 = vadd.f32 %v132_v55, %v88_v54  ;;  %v4719_v57 = vpop.f32.mrb[1].mxu0  ;;  %v5099_v55 = vld [vmem:[%s6667_s12 + $0x10] ss:$8 sps:$4 sm:$0xff]  }
  0xef   :  { %v135_v58 = vpop.f32.mrb[2].mxu0  ;;  %v5104_v57 = vld [vmem:[%s6667_s12 + $0x24] ss:$8 sps:$4 sm:$0xff]  }
  0xf0   :  { %v138_v60 = vpack.c.bf16 %v133_v56, %v133_v56  ;;  %v4720_v61 = vpop.f32.mrb[3].mxu0 }
  0xf1   :  { %v5107_v61 = vld [vmem:[%s6667_s12 + $0x34] ss:$8 sps:$4 sm:$0xff]  }
  0xf2   :  { %4178 = vmatmul.mubr.msk.bf16.vlgmr.msra.gmra.mrb[0].mxu1 %vm180_vm4, %v138_v60 }
  0xf3   :  { %241 = vmatpush1.bf16.msra.mxu1 %v5679_v59  ;;  %272 = vmatprep.mubr.bf16.mxu1 %v5388_v6 }
  0xfa   :  { %4179 = vmatmul.mubr.msk.bf16.vlgmr.msra.gmra.mrb[4].mxu1 %vm180_vm4, %v138_v60  ;;  %v5102_v60 = vld [vmem:[%s6667_s12 + $0x20] ss:$8 sps:$4 sm:$0xff]  }
  0xfb   :  { %339 = vmatprep.mubr.bf16.mxu1 %v5388_v6 }
 0x1c5   :  { %v233_v4 = vpop.f32.mrb[0].mxu1 }
 0x1c6   :  { %v234_v5 = vadd.f32 %v233_v4, %v145_v2  ;;  %v235_v8 = vpop.f32.mrb[1].mxu1  ;;  %v5110_v2 = vld [vmem:[%s6667_s12 + $0x44] ss:$8 sps:$4 sm:$0xff]   ;;  %v5113_v4 = vld [vmem:[%s6667_s12 + $0x54] ss:$8 sps:$4 sm:$0xff]  }
 0x1c7   :  { %v236_v10 = vadd.f32 %v235_v8, %v149_v3  ;;  %v237_v11 = vpop.f32.mrb[2].mxu1  ;;  %v5108_v3 = vld [vmem:[%s6667_s12 + $0x40] ss:$8 sps:$4 sm:$0xff]   ;;  %v5116_v8 = vld [vmem:[%s6667_s12 + $0x64] ss:$8 sps:$4 sm:$0xff]  }
 0x1c8   :  { %v281_v13 = vmax.f32 %v234_v5, 0.0  ;;  %v238_v14 = vpop.f32.mrb[3].mxu1  ;;  %v5111_v5 = vld [vmem:[%s6667_s12 + $0x50] ss:$8 sps:$4 sm:$0xff]   ;;  %v5119_v11 = vld [vmem:[%s6667_s12 + $0x74] ss:$8 sps:$4 sm:$0xff]  }
 0x1c9   :  { %v282_v16 = vmax.f32 %v236_v10, 0.0  ;;  %v5114_v10 = vld [vmem:[%s6667_s12 + $0x60] ss:$8 sps:$4 sm:$0xff]   ;;  %v5122_v14 = vld [vmem:[%s6667_s12 + $0x84] ss:$8 sps:$4 sm:$0xff]  }
 0x1ca   :  { %v286_v18 = vpack.c.bf16 %v281_v13, %v281_v13  ;;  %v5117_v13 = vld [vmem:[%s6667_s12 + $0x70] ss:$8 sps:$4 sm:$0xff]  }
 0x1cb   :  { %v287_v36 = vpack.c.bf16 %v282_v16, %v282_v16  ;;  %v5120_v16 = vld [vmem:[%s6667_s12 + $0x80] ss:$8 sps:$4 sm:$0xff]  }
 0x1cc   :  { %v296_v40 = vsel %vm294_vm5, %v286_v18, 0  ;;  %v5125_v18 = vld [vmem:[%s6667_s12 + $0x94] ss:$8 sps:$4 sm:$0xff]  }
 0x1cd   :  { %v274_v41 = vpop.f32.mrb[4].mxu1  ;;  %4180 = vmatprep.subr.msk.bf16.mxu1 %vm294_vm5, %v287_v36  ;;  %v5128_v36 = vld [vmem:[%s6667_s12 + $0xa4] ss:$8 sps:$4 sm:$0xff]  }
 0x1ce   :  { %v275_v42 = vadd.f32 %v274_v41, %v153_v35  ;;  %v276_v43 = vpop.f32.mrb[5].mxu1  ;;  %308 = vmatpush1.bf16.msra.mxu1 %v296_v40  ;;  %v5123_v35 = vld [vmem:[%s6667_s12 + $0x90] ss:$8 sps:$4 sm:$0xff]   ;;  %v5134_v41 = vld [vmem:[%s6667_s12 + $0xc4] ss:$8 sps:$4 sm:$0xff]  }
 0x1cf   :  { %v277_v47 = vadd.f32 %v276_v43, %v157_v37  ;;  %v278_v48 = vpop.f32.mrb[6].mxu1  ;;  %789 = vmatprep.subr.bf16.mxu1 %v5098_v38  ;;  %v5126_v37 = vld [vmem:[%s6667_s12 + $0xa0] ss:$8 sps:$4 sm:$0xff]   ;;  %v5131_v38 = vld [vmem:[%s6667_s12 + $0xb4] ss:$8 sps:$4 sm:$0xff]  }
 0x1d0   :  { %v283_v50 = vmax.f32 %v275_v42, 0.0  ;;  %v279_v51 = vpop.f32.mrb[7].mxu1  ;;  %v5129_v40 = vld [vmem:[%s6667_s12 + $0xb0] ss:$8 sps:$4 sm:$0xff]   ;;  %v5132_v42 = vld [vmem:[%s6667_s12 + $0xc0] ss:$8 sps:$4 sm:$0xff]  }
 0x1d1   :  { %v284_v52 = vmax.f32 %v277_v47, 0.0  ;;  %4181 = vmatmul.mubr.msk.bf16.vlgmr.msra.gmra.mrb[8].mxu1 %vm290_vm6, %v285_v44  ;;  %v5137_v43 = vld [vmem:[%s6667_s12 + $0xd4] ss:$8 sps:$4 sm:$0xff]   ;;  %v5138_v47 = vld [vmem:[%s6667_s12 + $0xe0] ss:$8 sps:$4 sm:$0xff]  }
 0x1d2   :  { %v288_v54 = vpack.c.bf16 %v283_v50, %v283_v50  ;;  %790 = vmatpush1.bf16.msra.mxu1 %v5096_v45  ;;  %v5140_v45 = vld [vmem:[%s6667_s12 + $0xe4] ss:$8 sps:$4 sm:$0xff]   ;;  %v5143_v48 = vld [vmem:[%s6667_s12 + $0xf4] ss:$8 sps:$4 sm:$0xff]  }
 0x1d3   :  { %v289_v56 = vpack.c.bf16 %v284_v52, %v284_v52  ;;  %791 = vmatprep.subr.bf16.mxu1 %v5101_v49  ;;  %v5141_v49 = vld [vmem:[%s6667_s12 + $0xf0] ss:$8 sps:$4 sm:$0xff]   ;;  %v5146_v50 = vld [vmem:[%s6667_s12 + $0x104] ss:$8 sps:$4 sm:$0xff]  }
 0x1d4   :  { %v302_v58 = vsel %vm294_vm5, %v288_v54, 0 }
 0x1d5   :  { %4182 = vmatprep.subr.msk.bf16.mxu0 %vm294_vm5, %v289_v56  ;;  %v5144_v56 = vld [vmem:[%s6667_s12 + $0x100] ss:$8 sps:$4 sm:$0xff]  }
 0x1d6   :  { %349 = vmatpush1.bf16.msra.mxu0 %v302_v58  ;;  %792 = vmatpush1.bf16.msra.mxu1 %v5099_v55 }
 0x1d7   :  { %793 = vmatprep.subr.bf16.mxu1 %v5104_v57 }
 0x1d9   :  { %4183 = vmatmul.mubr.msk.bf16.vlgmr.msra.gmra.mrb[4].mxu0 %vm290_vm6, %v285_v44  ;;  %v5135_v44 = vld [vmem:[%s6667_s12 + $0xd0] ss:$8 sps:$4 sm:$0xff]  }
 0x1da   :  { %794 = vmatpush1.bf16.msra.mxu1 %v5102_v60  ;;  %957 = vmatprep.mubr.bf16.mxu0 %v5388_v6  ;;  %v5149_v60 = vld [vmem:[%s6667_s12 + $0x114] ss:$8 sps:$4 sm:$0xff]  }
 0x1db   :  { %795 = vmatprep.subr.bf16.mxu1 %v5107_v61  ;;  %v5147_v61 = vld [vmem:[%s6667_s12 + $0x110] ss:$8 sps:$4 sm:$0xff]  }
 0x1de   :  { %796 = vmatpush1.bf16.msra.mxu1 %v5105_v63  ;;  %v5152_v63 = vld [vmem:[%s6667_s12 + $0x124] ss:$8 sps:$4 sm:$0xff]  }
 0x1df   :  { %797 = vmatprep.subr.bf16.mxu1 %v5110_v2 }
 0x1e2   :  { %798 = vmatpush1.bf16.msra.mxu1 %v5108_v3 }
 0x1e3   :  { %799 = vmatprep.subr.bf16.mxu1 %v5113_v4  ;;  %v5150_v4 = vld [vmem:[%s6667_s12 + $0x120] ss:$8 sps:$4 sm:$0xff]  }
 0x1e6   :  { %800 = vmatpush1.bf16.msra.mxu1 %v5111_v5 }
 0x1e7   :  { %801 = vmatprep.subr.bf16.mxu1 %v5116_v8 }
 0x1ea   :  { %802 = vmatpush1.bf16.msra.mxu1 %v5114_v10  ;;  %v5155_v10 = vld [vmem:[%s6667_s12 + $0x134] ss:$8 sps:$4 sm:$0xff]  }
 0x1eb   :  { %803 = vmatprep.subr.bf16.mxu1 %v5119_v11 }
 0x1ee   :  { %804 = vmatpush1.bf16.msra.mxu1 %v5117_v13  ;;  %v5153_v13 = vld [vmem:[%s6667_s12 + $0x130] ss:$8 sps:$4 sm:$0xff]  }
 0x1ef   :  { %805 = vmatprep.subr.bf16.mxu1 %v5122_v14  ;;  %v5158_v14 = vld [vmem:[%s6667_s12 + $0x144] ss:$8 sps:$4 sm:$0xff]  }
 0x1f2   :  { %806 = vmatpush1.bf16.msra.mxu1 %v5120_v16  ;;  %v5156_v16 = vld [vmem:[%s6667_s12 + $0x140] ss:$8 sps:$4 sm:$0xff]  }
 0x1f3   :  { %807 = vmatprep.subr.bf16.mxu1 %v5125_v18  ;;  %v5161_v18 = vld [vmem:[%s6667_s12 + $0x154] ss:$8 sps:$4 sm:$0xff]  }
 0x1f6   :  { %808 = vmatpush1.bf16.msra.mxu1 %v5123_v35  ;;  %v5159_v35 = vld [vmem:[%s6667_s12 + $0x150] ss:$8 sps:$4 sm:$0xff]  }
 0x1f7   :  { %809 = vmatprep.subr.bf16.mxu1 %v5128_v36  ;;  %v5164_v36 = vld [vmem:[%s6667_s12 + $0x164] ss:$8 sps:$4 sm:$0xff]  }
 0x1fa   :  { %810 = vmatpush1.bf16.msra.mxu1 %v5126_v37  ;;  %v5162_v37 = vld [vmem:[%s6667_s12 + $0x160] ss:$8 sps:$4 sm:$0xff]  }
 0x1fb   :  { %811 = vmatprep.subr.bf16.mxu1 %v5131_v38  ;;  %v5167_v38 = vld [vmem:[%s6667_s12 + $0x174] ss:$8 sps:$4 sm:$0xff]  }
 0x1fe   :  { %812 = vmatpush1.bf16.msra.mxu1 %v5129_v40  ;;  %v5165_v40 = vld [vmem:[%s6667_s12 + $0x170] ss:$8 sps:$4 sm:$0xff]  }
 0x1ff   :  { %813 = vmatprep.subr.bf16.mxu1 %v5134_v41  ;;  %v5170_v41 = vld [vmem:[%s6667_s12 + $0x184] ss:$8 sps:$4 sm:$0xff]  }
 0x202   :  { %814 = vmatpush1.bf16.msra.mxu1 %v5132_v42  ;;  %v5168_v42 = vld [vmem:[%s6667_s12 + $0x180] ss:$8 sps:$4 sm:$0xff]  }
 0x203   :  { %815 = vmatprep.subr.bf16.mxu1 %v5137_v43  ;;  %v5173_v43 = vld [vmem:[%s6667_s12 + $0x194] ss:$8 sps:$4 sm:$0xff]  }
 0x206   :  { %816 = vmatpush1.bf16.msra.mxu1 %v5135_v44  ;;  %v5171_v44 = vld [vmem:[%s6667_s12 + $0x190] ss:$8 sps:$4 sm:$0xff]  }
 0x207   :  { %817 = vmatprep.subr.bf16.mxu1 %v5140_v45  ;;  %v5176_v45 = vld [vmem:[%s6667_s12 + $0x1a4] ss:$8 sps:$4 sm:$0xff]  }
 0x20a   :  { %818 = vmatpush1.bf16.msra.mxu1 %v5138_v47  ;;  %v5174_v47 = vld [vmem:[%s6667_s12 + $0x1a0] ss:$8 sps:$4 sm:$0xff]  }
 0x20b   :  { %819 = vmatprep.subr.bf16.mxu1 %v5143_v48  ;;  %v5179_v48 = vld [vmem:[%s6667_s12 + $0x1b4] ss:$8 sps:$4 sm:$0xff]  }
 0x20e   :  { %820 = vmatpush1.bf16.msra.mxu1 %v5141_v49  ;;  %v5177_v49 = vld [vmem:[%s6667_s12 + $0x1b0] ss:$8 sps:$4 sm:$0xff]  }
 0x20f   :  { %830 = vmatprep.subr.bf16.mxu1 %v5146_v50  ;;  %v5182_v50 = vld [vmem:[%s6667_s12 + $0x1c4] ss:$8 sps:$4 sm:$0xff]  }
 0x2a4   :  { %v341_v51 = vpop.f32.mrb[8].mxu1 }
 0x2a5   :  { %v343_v52 = vpop.f32.mrb[9].mxu1  ;;  %v389_v57 = vpack.c.bf16 %v341_v51, %v341_v51  ;;  %v5180_v51 = vld [vmem:[%s6667_s12 + $0x1c0] ss:$8 sps:$4 sm:$0xff]  }
 0x2a6   :  { %v390_v54 = vpack.c.bf16 %v343_v52, %v343_v52  ;;  %v345_v55 = vpop.f32.mrb[10].mxu1  ;;  %v5185_v52 = vld [vmem:[%s6667_s12 + $0x1d4] ss:$8 sps:$4 sm:$0xff]  }
 0x2a7   :  { %v346_v58 = vpop.f32.mrb[11].mxu1  ;;  %v5188_v55 = vld [vmem:[%s6667_s12 + $0x1e4] ss:$8 sps:$4 sm:$0xff]  }
 0x2a8   :  { %821 = vmatprep.mubr.bf16.mxu1 %v390_v54  ;;  %v5183_v54 = vld [vmem:[%s6667_s12 + $0x1d0] ss:$8 sps:$4 sm:$0xff]  }
 0x2a9   :  { %822 = vmatmul.mubr.bf16.vlgmr.msra.gmra.mrb[12].mxu1 %v389_v57  ;;  %v5191_v57 = vld [vmem:[%s6667_s12 + $0x1f4] ss:$8 sps:$4 sm:$0xff]   ;;  %v5189_v58 = vld [vmem:[%s6667_s12 + $0x1f0] ss:$8 sps:$4 sm:$0xff]  }
 0x2aa   :  { %831 = vmatpush1.bf16.msra.mxu1 %v5144_v56  ;;  %v5186_v56 = vld [vmem:[%s6667_s12 + $0x1e0] ss:$8 sps:$4 sm:$0xff]  }
 0x2ab   :  { %832 = vmatprep.subr.bf16.mxu1 %v5149_v60 }
 0x2ac   :  { %v5824_v2 = vpop.f32.mrb[4].mxu0 }
 0x2ad   :  { %v384_v3 = vpop.f32.mrb[5].mxu0  ;;  %v391_v60 = vpack.c.bf16 %v5824_v2, %v5824_v2  ;;  %v5198_v2 = vld [vmem:[%s6671_s14 + $0x50] sm:$0xff]  }
 0x2ae   :  { %833 = vmatpush1.bf16.msra.mxu1 %v5147_v61  ;;  %v392_v5 = vpack.c.bf16 %v384_v3, %v384_v3  ;;  %v386_v8 = vpop.f32.mrb[6].mxu0  ;;  %v880_v61 = vld [vmem:[%s6698_s1 + $0x8] sm:$0xff] }
 0x2af   :  { %834 = vmatprep.subr.bf16.mxu1 %v5152_v63  ;;  %v387_v11 = vpop.f32.mrb[7].mxu0  ;;  %890 = vperm.xlu1 %5094, %v880_v61   ;;  %v5197_v63 = vld [vmem:[%s6671_s14 + $0x8] sm:$0xff]   ;;  %v5201_v8 = vld [vmem:[%s6671_s14 + $0x18] sm:$0xff]  }
 0x2b0   :  { %862 = vmatprep.mubr.bf16.mxu1 %v392_v5  ;;  %v5193_v3 = vld [vmem:[%s6670_s3 + $0x8] sm:$0xff]   ;;  %v5200_v5 = vld [vmem:[%s6671_s14 + $0x58] sm:$0xff]   ;;  %v5203_v11 = vld [vmem:[%s6671_s14 + $0x20] sm:$0xff]  }
 0x2b2   :  { %835 = vmatpush1.bf16.msra.mxu1 %v5150_v4  ;;  %v5199_v4 = vld [vmem:[%s6671_s14 + $0x10] sm:$0xff]  }
 0x2b3   :  { %836 = vmatprep.subr.bf16.mxu1 %v5155_v10  ;;  %895 = vperm.xlu1 %5094, %v5609_v26   ;;  %v5202_v10 = vld [vmem:[%s6671_s14 + $0x60] sm:$0xff]  }
 0x2b6   :  { %837 = vmatpush1.bf16.msra.mxu1 %v5153_v13  ;;  %v5204_v13 = vld [vmem:[%s6671_s14 + $0x68] sm:$0xff]  }
 0x2b7   :  { %838 = vmatprep.subr.bf16.mxu1 %v5158_v14  ;;  %1404 = vperm.xlu1 %5094, %v5615_v27   ;;  %v5205_v14 = vld [vmem:[%s6671_s14 + $0x28] sm:$0xff]  }
 0x2ba   :  { %839 = vmatpush1.bf16.msra.mxu1 %v5156_v16  ;;  %v5206_v16 = vld [vmem:[%s6671_s14 + $0x70] sm:$0xff]  }
 0x2bb   :  { %840 = vmatprep.subr.bf16.mxu1 %v5161_v18  ;;  %1414 = vperm.xlu1 %5094, %v5621_v28   ;;  %v5207_v18 = vld [vmem:[%s6671_s14 + $0x30] sm:$0xff]  }
 0x2be   :  { %841 = vmatpush1.bf16.msra.mxu1 %v5159_v35  ;;  %v5208_v35 = vld [vmem:[%s6671_s14 + $0x78] sm:$0xff]  }
 0x2bf   :  { %842 = vmatprep.subr.bf16.mxu1 %v5164_v36  ;;  %1424 = vperm.xlu1 %5094, %v5627_v29   ;;  %v5209_v36 = vld [vmem:[%s6671_s14 + $0x38] sm:$0xff]  }
 0x2c2   :  { %843 = vmatpush1.bf16.msra.mxu1 %v5162_v37 }
 0x2c3   :  { %844 = vmatprep.subr.bf16.mxu1 %v5167_v38  ;;  %1434 = vperm.xlu1 %5094, %v5633_v30   ;;  %v5194_v30 = vld [vmem:[%s6671_s14 + $0x40] sm:$0xff]   ;;  %v886_v38 = vpop.permute.xlu0 %885 }
 0x2c6   :  { %845 = vmatpush1.bf16.msra.mxu1 %v5165_v40 }
 0x2c7   :  { %846 = vmatprep.subr.bf16.mxu1 %v5170_v41  ;;  %1444 = vperm.xlu1 %5094, %v5639_v31  }
 0x2ca   :  { %847 = vmatpush1.bf16.msra.mxu1 %v5168_v42 }
 0x2cb   :  { %848 = vmatprep.subr.bf16.mxu1 %v5173_v43  ;;  %1454 = vperm.xlu1 %5094, %v5645_v32   ;;  %v5192_v32 = vld [vmem:[%s6670_s3] sm:$0xff]  }
 0x2ce   :  { %849 = vmatpush1.bf16.msra.mxu1 %v5171_v44 }
 0x2cf   :  { %850 = vmatprep.subr.bf16.mxu1 %v5176_v45  ;;  %1464 = vperm.xlu1 %5094, %v5651_v33   ;;  %v5195_v33 = vld [vmem:[%s6671_s14] sm:$0xff]  }
 0x2d2   :  { %851 = vmatpush1.bf16.msra.mxu1 %v5174_v47 }
 0x2d3   :  { %852 = vmatprep.subr.bf16.mxu1 %v5179_v48  ;;  %1474 = vperm.xlu1 %5094, %v5657_v34   ;;  %v5196_v34 = vld [vmem:[%s6671_s14 + $0x48] sm:$0xff]  }
 0x2d6   :  { %853 = vmatpush1.bf16.msra.mxu1 %v5177_v49 }
 0x2d7   :  { %854 = vmatprep.subr.bf16.mxu1 %v5182_v50  ;;  %2143 = vperm.xlu1 %5094, %v5526_v7   ;;  %v4044_v7 = vld [vmem:[%s6701_s28] sm:$0x7] }
 0x2da   :  { %855 = vmatpush1.bf16.msra.mxu1 %v5180_v51 }
 0x2db   :  { %856 = vmatprep.subr.bf16.mxu1 %v5185_v52  ;;  %2938 = vperm.xlu1 %5094, %v880_v61   ;;  %v901_v52 = vpop.permute.xlu0 %900 }
 0x2de   :  { %857 = vmatpush1.bf16.msra.mxu1 %v5183_v54 }
 0x2df   :  { %858 = vmatprep.subr.bf16.mxu1 %v5188_v55  ;;  %2948 = vperm.xlu1 %5094, %v5548_v15   ;;  %v457_v15 = vld [vmem:[%s6672_s13] sm:$0x3] }
 0x2e2   :  { %859 = vmatpush1.bf16.msra.mxu1 %v5186_v56 }
 0x2e3   :  { %860 = vmatprep.subr.bf16.mxu1 %v5191_v57  ;;  %3456 = vperm.xlu1 %5094, %v5556_v17   ;;  %v462_v17 = vrot.slane %v457_v15, %v5687_v62 }
 0x2e6   :  { %861 = vmatpush1.bf16.msra.mxu1 %v5189_v58 }
 0x2e7   :  { %3466 = vperm.xlu1 %5094, %v5565_v19   ;;  %v466_v19 = vrot.slane %v457_v15, %v5693_v1 }
 0x2e9   :  { %863 = vmatmul.mubr.bf16.vlgmr.msra.gmra.mrb[12].mxu1 %v391_v60 }
 0x2eb   :  { %3476 = vperm.xlu1 %5094, %v5573_v20  }
 0x2ef   :  { %3486 = vperm.xlu1 %5094, %v5579_v21  }
 0x2f3   :  { %3496 = vperm.xlu1 %5094, %v5585_v22  }
 0x2f7   :  { %3506 = vperm.xlu1 %5094, %v5591_v23  }
 0x2fb   :  { %3516 = vperm.xlu1 %5094, %v5597_v24  }
 0x2ff   :  { %3526 = vperm.xlu1 %5094, %v5603_v25  }
 0x303   :  { %4047 = vperm.xlu1 %5094, %v4044_v7  }
 0x32e   :  { %v891_v41 = vpop.permute.xlu1 %890 }
 0x332   :  { %v896_v55 = vpop.permute.xlu1 %895 }
 0x3bc   :  { %v864_v20 = vpop.f32.mrb[12].mxu1 }
 0x3bd   :  { %v5075_v21 = vadd.f32 %v864_v20, %v462_v17  ;;  %v866_v22 = vpop.f32.mrb[13].mxu1 }
 0x3be   :  { %v5076_v23 = vadd.f32 %v866_v22, %v466_v19  ;;  %v868_v24 = vpop.f32.mrb[14].mxu1  ;;  %v5210_v19 = vld [vmem:[%s6673_s8] sm:$0xff]  }
 0x3bf   :  { %v871_v26 = vmax.f32 %v5075_v21, 0.0  ;;  %v869_v25 = vpop.f32.mrb[15].mxu1  ;;  %v4253_v21 = vld [vmem:[%s6675_s15] ss:$0 sm:$0xff] }
 0x3c0   :  { %v872_v27 = vmax.f32 %v5076_v23, 0.0 }
 0x3c1   :  { %v877_v28 = vpack.c.bf16 %v871_v26, %v871_v26 }
 0x3c2   :  { %v878_v29 = vpack.c.bf16 %v872_v27, %v872_v27 }
 0x3c3   :  { %v920_v31 = vsel %vm294_vm5, %v877_v28, 0 }
 0x3c4   :  { %4250 = vmatprep.subr.msk.bf16.mxu0 %vm294_vm5, %v878_v29 }
 0x3c5   :  { %926 = vmatpush1.bf16.msra.mxu0 %v920_v31 }
 0x3c6   :  { %4510 = vmatprep.subr.bf16.mxu0 %v5194_v30 }
 0x3c8   :  { %4251 = vmatmul.mubr.msk.bf16.vlgmr.msra.gmra.mrb[8].mxu0 %vm290_vm6, %v5192_v32 }
 0x3c9   :  { %967 = vmatprep.mubr.bf16.mxu0 %v5388_v6  ;;  %4511 = vmatpush3.bf16.msra.mxu0 %v5195_v33 }
 0x3ca   :  { %4512 = vmatprep.subr.bf16.mxu0 %v5196_v34 }
 0x3cd   :  { %4513 = vmatpush3.bf16.msra.mxu0 %v5197_v63 }
 0x3ce   :  { %4514 = vmatprep.subr.bf16.mxu0 %v5198_v2 }
 0x3d0   :  { %4252 = vmatmul.mubr.msk.bf16.gmra.mrb[12].mxu0 %vm290_vm6, %v5193_v3 }
 0x3d1   :  { %4515 = vmatpush3.bf16.msra.mxu0 %v5199_v4 }
 0x3d2   :  { %4516 = vmatprep.subr.bf16.mxu0 %v5200_v5 }
 0x3d5   :  { %4517 = vmatpush3.bf16.msra.mxu0 %v5201_v8 }
 0x3d6   :  { %4518 = vmatprep.subr.bf16.mxu0 %v5202_v10 }
 0x3d9   :  { %4519 = vmatpush3.bf16.msra.mxu0 %v5203_v11 }
 0x3da   :  { %4520 = vmatprep.subr.bf16.mxu0 %v5204_v13  ;;  %v5212_v13 = vld [vmem:[%s6674_s16] sm:$0xff]  }
 0x3dd   :  { %4521 = vmatpush3.bf16.msra.mxu0 %v5205_v14  ;;  %v5211_v14 = vld [vmem:[%s6673_s8 + $0x8] sm:$0xff]  }
 0x3de   :  { %4522 = vmatprep.subr.bf16.mxu0 %v5206_v16  ;;  %v5213_v16 = vld [vmem:[%s6674_s16 + $0x8] sm:$0xff]  }
 0x3e1   :  { %4523 = vmatpush3.bf16.msra.mxu0 %v5207_v18  ;;  %v5214_v18 = vld [vmem:[%s6674_s16 + $0x10] sm:$0xff]  }
 0x3e2   :  { %4524 = vmatprep.subr.bf16.mxu0 %v5208_v35  ;;  %v5215_v35 = vld [vmem:[%s6674_s16 + $0x18] sm:$0xff]  }
 0x3e5   :  { %4525 = vmatpush3.bf16.msra.mxu0 %v5209_v36  ;;  %v5216_v36 = vld [vmem:[%s6674_s16 + $0x20] sm:$0xff]  }
 0x49b   :  { %v959_v37 = vpop.f32.mrb[8].mxu0 }
 0x49c   :  { %v961_v40 = vpop.f32.mrb[9].mxu0  ;;  %v960_v43 = vadd.f32 %v959_v37, %v886_v38  ;;  %v5217_v37 = vld [vmem:[%s6674_s16 + $0x28] sm:$0xff]  }
 0x49d   :  { %v963_v42 = vpop.f32.mrb[10].mxu0  ;;  %v962_v47 = vadd.f32 %v961_v40, %v886_v38  ;;  %v5218_v38 = vld [vmem:[%s6674_s16 + $0x30] sm:$0xff]   ;;  %v5219_v40 = vld [vmem:[%s6674_s16 + $0x38] sm:$0xff]  }
 0x49e   :  { %v964_v44 = vadd.f32 %v963_v42, %v891_v41  ;;  %v965_v45 = vpop.f32.mrb[11].mxu0 }
 0x49f   :  { %v966_v48 = vadd.f32 %v965_v45, %v891_v41 }
 0x4a0   :  { %v978_v49 = vpack.c.bf16 %v964_v44, %v960_v43 }
 0x4a1   :  { %v979_v50 = vpack.c.bf16 %v966_v48, %v962_v47  ;;  %v5220_v48 = vld [vmem:[%s6676_s5] sm:$0xff]  }
 0x4a3   :  { %v969_v51 = vpop.f32.mrb[12].mxu0  ;;  %1149 = vmatprep.mubr.bf16.mxu0 %v979_v50 }
 0x4a4   :  { %v971_v54 = vpop.f32.mrb[13].mxu0  ;;  %1150 = vmatmul.mubr.bf16.vlgmr.msra.gmra.mrb[16].mxu0 %v978_v49  ;;  %v970_v57 = vadd.f32 %v969_v51, %v896_v55  ;;  %v4274_v49 = vld [vmem:[%s6678_s17] ss:$0 sm:$0xff] }
 0x4a5   :  { %v973_v56 = vpop.f32.mrb[14].mxu0  ;;  %v972_v61 = vadd.f32 %v971_v54, %v896_v55 }
 0x4a6   :  { %v974_v58 = vadd.f32 %v973_v56, %v901_v52  ;;  %v975_v60 = vpop.f32.mrb[15].mxu0 }
 0x4a7   :  { %v976_v7 = vadd.f32 %v975_v60, %v901_v52 }
 0x4a8   :  { %v980_v15 = vpack.c.bf16 %v974_v58, %v970_v57 }
 0x4a9   :  { %v981_v17 = vpack.c.bf16 %v976_v7, %v972_v61 }
 0x4ab   :  { %1157 = vmatprep.mubr.bf16.mxu0 %v981_v17 }
 0x4ac   :  { %1158 = vmatmul.mubr.bf16.gmra.mrb[20].mxu0 %v980_v15 }
 0x4ad   :  { %4725 = vmatprep.mubr.msk.bf16.mxu0 %vm1186_vm7, %v5210_v19 }
 0x577   :  { %v4526_v20 = vpop.f32.mrb[16].mxu0 }
 0x578   :  { %v4527_v22 = vpop.f32.mrb[17].mxu0 }
 0x579   :  { %v4528_v23 = vadd.f32 %v4527_v22, %v4526_v20  ;;  %v4529_v24 = vpop.f32.mrb[18].mxu0  ;;  %v5228_v20 = vld [vmem:[%s6677_s18] sm:$0xff]   ;;  %v5222_v22 = vld [vmem:[%s6676_s5 + $0x10] sm:$0xff]  }
 0x57a   :  { %v4530_v26 = vpop.f32.mrb[19].mxu0 }
 0x57b   :  { %v1152_v25 = vadd.f32 %v4528_v23, %v4253_v21  ;;  %v4531_v27 = vadd.f32 %v4530_v26, %v4529_v24  ;;  %v5229_v23 = vld [vmem:[%s6677_s18 + $0x8] sm:$0xff]   ;;  %v5230_v24 = vld [vmem:[%s6677_s18 + $0x10] sm:$0xff]   ;;  %v5223_v26 = vld [vmem:[%s6676_s5 + $0x18] sm:$0xff]  }
 0x57d   :  { %v1155_v28 = vadd.f32 %v4531_v27, %v4253_v21  ;;  %v1166_v29 = vmax.f32 %v1152_v25, 0.0  ;;  %v5224_v25 = vld [vmem:[%s6676_s5 + $0x20] sm:$0xff]   ;;  %v5225_v27 = vld [vmem:[%s6676_s5 + $0x28] sm:$0xff]  }
 0x57f   :  { %v1167_v30 = vmax.f32 %v1155_v28, 0.0  ;;  %v4532_v31 = vpop.f32.mrb[20].mxu0  ;;  %v5226_v28 = vld [vmem:[%s6676_s5 + $0x30] sm:$0xff]  }
 0x580   :  { %v4533_v32 = vpop.f32.mrb[21].mxu0 }
 0x581   :  { %v4534_v33 = vadd.f32 %v4533_v32, %v4532_v31  ;;  %v4535_v34 = vpop.f32.mrb[22].mxu0  ;;  %v1174_v63 = vpack.c.bf16 %v1167_v30, %v1166_v29  ;;  %v5227_v29 = vld [vmem:[%s6676_s5 + $0x38] sm:$0xff]   ;;  %v1410_v31 = vpop.permute.xlu0 %1409 }
 0x582   :  { %v4536_v2 = vpop.f32.mrb[23].mxu0  ;;  %v5231_v30 = vld [vmem:[%s6677_s18 + $0x18] sm:$0xff]   ;;  %v1405_v32 = vpop.permute.xlu1 %1404 }
 0x583   :  { %v1160_v3 = vadd.f32 %v4534_v33, %v4253_v21  ;;  %v4537_v4 = vadd.f32 %v4536_v2, %v4535_v34  ;;  %4721 = vmatprep.subr.bf16.mxu0 %v1174_v63 }
 0x584   :  { %4722 = vmatpush3.bf16.msra.mxu0 %v1174_v63 }
 0x585   :  { %v1163_v5 = vadd.f32 %v4537_v4, %v4253_v21  ;;  %v1168_v8 = vmax.f32 %v1160_v3, 0.0  ;;  %v5221_v21 = vld [vmem:[%s6676_s5 + $0x8] sm:$0xff]   ;;  %v1420_v33 = vpop.permute.xlu0 %1419 }
 0x586   :  { %v1415_v34 = vpop.permute.xlu1 %1414 }
 0x587   :  { %v1169_v10 = vmax.f32 %v1163_v5, 0.0 }
 0x589   :  { %v1175_v11 = vpack.c.bf16 %v1169_v10, %v1168_v8  ;;  %v1430_v63 = vpop.permute.xlu0 %1429 }
 0x58a   :  { %v1425_v2 = vpop.permute.xlu1 %1424 }
 0x58b   :  { %4723 = vmatprep.subr.bf16.mxu0 %v1175_v11 }
 0x58c   :  { %4724 = vmatpush3.bf16.msra.mxu0 %v1175_v11 }
 0x58d   :  { %4729 = vmatprep.subr.bf16.mxu0 %v5212_v13  ;;  %v1440_v4 = vpop.permute.xlu0 %1439 }
 0x58e   :  { %v1435_v8 = vpop.permute.xlu1 %1434 }
 0x58f   :  { %4726 = vmatmul.mubr.msk.bf16.vlgmr.msra.gmra.mrb[24].mxu0 %vm1186_vm7, %v5211_v14 }
 0x590   :  { %4730 = vmatpush3.bf16.msra.mxu0 %v5212_v13 }
 0x591   :  { %4731 = vmatprep.subr.bf16.mxu0 %v5213_v16 }
 0x594   :  { %4732 = vmatpush3.bf16.msra.mxu0 %v5213_v16 }
 0x595   :  { %4733 = vmatprep.subr.bf16.mxu0 %v5214_v18 }
 0x598   :  { %4734 = vmatpush3.bf16.msra.mxu0 %v5214_v18 }
 0x599   :  { %4735 = vmatprep.subr.bf16.mxu0 %v5215_v35 }
 0x59c   :  { %4736 = vmatpush3.bf16.msra.mxu0 %v5215_v35 }
 0x59d   :  { %4737 = vmatprep.subr.bf16.mxu0 %v5216_v36 }
 0x5a0   :  { %4738 = vmatpush3.bf16.msra.mxu0 %v5216_v36 }
 0x5a1   :  { %4739 = vmatprep.subr.bf16.mxu0 %v5217_v37 }
 0x5a4   :  { %4740 = vmatpush3.bf16.msra.mxu0 %v5217_v37  ;;  %v1450_v37 = vpop.permute.xlu0 %1449 }
 0x5a5   :  { %4741 = vmatprep.subr.bf16.mxu0 %v5218_v38 }
 0x5a8   :  { %4742 = vmatpush3.bf16.msra.mxu0 %v5218_v38  ;;  %v1445_v38 = vpop.permute.xlu1 %1444 }
 0x5a9   :  { %4743 = vmatprep.subr.bf16.mxu0 %v5219_v40 }
 0x5ac   :  { %4744 = vmatpush3.bf16.msra.mxu0 %v5219_v40 }
 0x662   :  { %v4727_v41 = vpop.f32.mrb[24].mxu0 }
 0x663   :  { %v1227_v42 = vpop.f32.mrb[25].mxu0 }
 0x664   :  { %v4728_v43 = vpop.f32.mrb[26].mxu0 }
 0x665   :  { %v1243_v44 = vpack.c.bf16 %v4728_v43, %v4727_v41  ;;  %v1230_v45 = vpop.f32.mrb[27].mxu0 }
 0x666   :  { %v1242_v47 = vpack.c.bf16 %v1230_v45, %v1227_v42 }
 0x668   :  { %4745 = vmatprep.mubr.bf16.mxu0 %v1242_v47 }
 0x669   :  { %4746 = vmatmul.mubr.bf16.vlgmr.msra.gmra.mrb[28].mxu0 %v1243_v44 }
 0x66a   :  { %4753 = vmatprep.mubr.msk.bf16.mxu0 %vm1186_vm7, %v5220_v48 }
 0x73c   :  { %v4747_v50 = vpop.f32.mrb[28].mxu0 }
 0x73d   :  { %v1358_v51 = vadd.f32 %v4747_v50, %v4274_v49  ;;  %v1349_v52 = vpop.f32.mrb[29].mxu0 }
 0x73e   :  { %v1350_v54 = vadd.f32 %v4274_v49, %v1349_v52  ;;  %v4748_v55 = vpop.f32.mrb[30].mxu0 }
 0x73f   :  { %v1361_v56 = vadd.f32 %v4748_v55, %v4274_v49  ;;  %v1352_v57 = vpop.f32.mrb[31].mxu0  ;;  %v1366_v60 = vmax.f32 %v1358_v51, 0.0  ;;  %v1455_v51 = vpop.permute.xlu1 %1454 }
 0x740   :  { %v1353_v58 = vadd.f32 %v4274_v49, %v1352_v57  ;;  %v1364_v7 = vmax.f32 %v1350_v54, 0.0  ;;  %v1460_v49 = vpop.permute.xlu0 %1459 }
 0x741   :  { %v1367_v61 = vmax.f32 %v1361_v56, 0.0 }
 0x742   :  { %v1365_v15 = vmax.f32 %v1353_v58, 0.0 }
 0x743   :  { %v1385_v17 = vpack.c.bf16 %v1367_v61, %v1366_v60 }
 0x744   :  { %v1384_v19 = vpack.c.bf16 %v1365_v15, %v1364_v7  ;;  %v1470_v57 = vpop.permute.xlu0 %1469  ;;  %v1465_v7 = vpop.permute.xlu1 %1464 }
 0x746   :  { %4749 = vmatprep.subr.bf16.mxu0 %v1384_v19 }
 0x747   :  { %4750 = vmatpush3.bf16.msra.mxu0 %v1384_v19 }
 0x748   :  { %4751 = vmatprep.subr.bf16.mxu0 %v1385_v17 }
 0x74b   :  { %4752 = vmatpush3.bf16.msra.mxu0 %v1385_v17 }
 0x74c   :  { %4769 = vmatprep.subr.bf16.mxu0 %v5228_v20 }
 0x74e   :  { %4754 = vmatmul.mubr.msk.bf16.vlgmr.msra.gmra.mrb[32].mxu0 %vm1186_vm7, %v5221_v21 }
 0x74f   :  { %4757 = vmatprep.mubr.msk.bf16.mxu0 %vm1186_vm7, %v5222_v22  ;;  %4770 = vmatpush3.bf16.msra.mxu0 %v5228_v20  ;;  %v1480_v22 = vpop.permute.xlu0 %1479 }
 0x750   :  { %4771 = vmatprep.subr.bf16.mxu0 %v5229_v23 }
 0x753   :  { %4772 = vmatpush3.bf16.msra.mxu0 %v5229_v23 }
 0x754   :  { %4773 = vmatprep.subr.bf16.mxu0 %v5230_v24 }
 0x756   :  { %4758 = vmatmul.mubr.msk.bf16.gmra.mrb[36].mxu0 %vm1186_vm7, %v5223_v26 }
 0x757   :  { %4761 = vmatprep.mubr.msk.bf16.mxu0 %vm1186_vm7, %v5224_v25  ;;  %4774 = vmatpush3.bf16.msra.mxu0 %v5230_v24  ;;  %v1475_v24 = vpop.permute.xlu1 %1474 }
 0x758   :  { %4775 = vmatprep.subr.bf16.mxu0 %v5231_v30 }
 0x75b   :  { %4776 = vmatpush3.bf16.msra.mxu0 %v5231_v30 }
 0x75e   :  { %4762 = vmatmul.mubr.msk.bf16.gmra.mrb[40].mxu0 %vm1186_vm7, %v5225_v27 }
 0x75f   :  { %4765 = vmatprep.mubr.msk.bf16.mxu0 %vm1186_vm7, %v5226_v28 }
 0x766   :  { %4766 = vmatmul.mubr.msk.bf16.gmra.mrb[44].mxu0 %vm1186_vm7, %v5227_v29 }
 0x821   :  { %v4755_v3 = vpop.f32.mrb[32].mxu0 }
 0x822   :  { %v1580_v5 = vpop.f32.mrb[33].mxu0  ;;  %v1589_v11 = vadd.f32 %v4755_v3, %v1415_v34  ;;  %v4299_v34 = vld [vmem:[%s6680_s19] ss:$0 sm:$0xff] }
 0x823   :  { %v4756_v10 = vpop.f32.mrb[34].mxu0  ;;  %v1581_v16 = vadd.f32 %v1580_v5, %v1405_v32 }
 0x824   :  { %v1592_v13 = vadd.f32 %v4756_v10, %v1420_v33  ;;  %v1583_v14 = vpop.f32.mrb[35].mxu0  ;;  %v5232_v33 = vld [vmem:[%s6679_s9] sm:$0xff]  }
 0x825   :  { %v1584_v18 = vadd.f32 %v1583_v14, %v1410_v31  ;;  %4809 = vmatprep.mubr.bf16.mxu1 %v5232_v33 }
 0x826   :  { %v1644_v35 = vpack.c.bf16 %v1592_v13, %v1589_v11 }
 0x827   :  { %v1643_v36 = vpack.c.bf16 %v1584_v18, %v1581_v16 }
 0x829   :  { %v4759_v40 = vpop.f32.mrb[36].mxu0  ;;  %4777 = vmatprep.mubr.msk.bf16.mxu0 %vm1690_vm8, %v1643_v36 }
 0x82a   :  { %v1596_v41 = vpop.f32.mrb[37].mxu0  ;;  %4778 = vmatmul.mubr.msk.bf16.vlgmr.msra.gmra.mrb[48].mxu0 %vm1690_vm8, %v1644_v35  ;;  %v1605_v43 = vadd.f32 %v4759_v40, %v1435_v8 }
 0x82b   :  { %v4760_v42 = vpop.f32.mrb[38].mxu0  ;;  %v1597_v47 = vadd.f32 %v1596_v41, %v1425_v2 }
 0x82c   :  { %v1608_v44 = vadd.f32 %v4760_v42, %v1440_v4  ;;  %v1599_v45 = vpop.f32.mrb[39].mxu0 }
 0x82d   :  { %v1600_v48 = vadd.f32 %v1599_v45, %v1430_v63 }
 0x82e   :  { %v1646_v50 = vpack.c.bf16 %v1608_v44, %v1605_v43 }
 0x82f   :  { %v1645_v52 = vpack.c.bf16 %v1600_v48, %v1597_v47 }
 0x831   :  { %v4763_v54 = vpop.f32.mrb[40].mxu0  ;;  %4781 = vmatprep.mubr.msk.bf16.mxu0 %vm1690_vm8, %v1645_v52 }
 0x832   :  { %v1612_v55 = vpop.f32.mrb[41].mxu0  ;;  %4782 = vmatmul.mubr.msk.bf16.gmra.mrb[52].mxu0 %vm1690_vm8, %v1646_v50  ;;  %v1621_v58 = vadd.f32 %v4763_v54, %v1455_v51 }
 0x833   :  { %v4764_v56 = vpop.f32.mrb[42].mxu0  ;;  %v1613_v15 = vadd.f32 %v1612_v55, %v1445_v38 }
 0x834   :  { %v1624_v60 = vadd.f32 %v4764_v56, %v1460_v49  ;;  %v1615_v61 = vpop.f32.mrb[43].mxu0 }
 0x835   :  { %v1616_v17 = vadd.f32 %v1615_v61, %v1450_v37 }
 0x836   :  { %v1648_v19 = vpack.c.bf16 %v1624_v60, %v1621_v58 }
 0x837   :  { %v1647_v20 = vpack.c.bf16 %v1616_v17, %v1613_v15 }
 0x839   :  { %v4767_v21 = vpop.f32.mrb[44].mxu0  ;;  %4785 = vmatprep.mubr.msk.bf16.mxu0 %vm1690_vm8, %v1647_v20 }
 0x83a   :  { %v1628_v23 = vpop.f32.mrb[45].mxu0  ;;  %4786 = vmatmul.mubr.msk.bf16.gmra.mrb[56].mxu0 %vm1690_vm8, %v1648_v19  ;;  %v1637_v25 = vadd.f32 %v4767_v21, %v1475_v24 }
 0x83b   :  { %v4768_v26 = vpop.f32.mrb[46].mxu0  ;;  %v1629_v29 = vadd.f32 %v1628_v23, %v1465_v7 }
 0x83c   :  { %v1640_v27 = vadd.f32 %v4768_v26, %v1480_v22  ;;  %v1631_v28 = vpop.f32.mrb[47].mxu0 }
 0x83d   :  { %v1632_v30 = vadd.f32 %v1631_v28, %v1470_v57 }
 0x83e   :  { %v1650_v31 = vpack.c.bf16 %v1640_v27, %v1637_v25 }
 0x83f   :  { %v1649_v32 = vpack.c.bf16 %v1632_v30, %v1629_v29 }
 0x841   :  { %4789 = vmatprep.mubr.msk.bf16.mxu0 %vm1690_vm8, %v1649_v32 }
 0x842   :  { %4790 = vmatmul.mubr.msk.bf16.gmra.mrb[60].mxu0 %vm1690_vm8, %v1650_v31 }
 0x843   :  { %4857 = vmatprep.mubr.msk.f32.mxu0 %vm5387_vm0, %v5386_v0 }
 0x8fd   :  { %v4779_v63 = vpop.f32.mrb[48].mxu0 }
 0x8fe   :  { %v1758_v2 = vadd.f32 %v4779_v63, %v4299_v34  ;;  %v1749_v3 = vpop.f32.mrb[49].mxu0 }
 0x8ff   :  { %v1750_v4 = vadd.f32 %v4299_v34, %v1749_v3  ;;  %v4780_v5 = vpop.f32.mrb[50].mxu0 }
 0x900   :  { %v1761_v8 = vadd.f32 %v4780_v5, %v4299_v34  ;;  %v1752_v10 = vpop.f32.mrb[51].mxu0  ;;  %v1814_v13 = vmax.f32 %v1758_v2, 0.0  ;;  %v4338_v5 = vld [vmem:[%s6696_s29 + $0x40] sm:$0xff] }
 0x901   :  { %v1753_v11 = vadd.f32 %v4299_v34, %v1752_v10  ;;  %v1812_v16 = vmax.f32 %v1750_v4, 0.0  ;;  %v4337_v4 = vld [vmem:[%s6696_s29 + $0x38] sm:$0xff] }
 0x902   :  { %v1815_v14 = vmax.f32 %v1761_v8, 0.0  ;;  %v5234_v8 = vld [vmem:[%s6679_s9 + $0x10] sm:$0xff]   ;;  %v2136_v10 = vpack.c.bf16 %v4338_v5, %v4337_v4  ;;  %v1997_v4 = vld [vmem:[%s6681_s20] sm:$0x7] }
 0x903   :  { %v1813_v18 = vmax.f32 %v1753_v11, 0.0  ;;  %v4339_v11 = vld [vmem:[%s6696_s29 + $0x48] sm:$0xff] }
 0x904   :  { %v1845_v35 = vpack.c.bf16 %v1815_v14, %v1814_v13  ;;  %v4340_v13 = vld [vmem:[%s6696_s29 + $0x50] sm:$0xff] }
 0x905   :  { %v1844_v36 = vpack.c.bf16 %v1813_v18, %v1812_v16  ;;  %v4783_v37 = vpop.f32.mrb[52].mxu0  ;;  %v2137_v14 = vpack.c.bf16 %v4340_v13, %v4339_v11  ;;  %v4341_v16 = vld [vmem:[%s6696_s29 + $0x58] sm:$0xff]  ;;  %v4342_v18 = vld [vmem:[%s6696_s29 + $0x60] sm:$0xff] }
 0x906   :  { %v1774_v38 = vadd.f32 %v4783_v37, %v4299_v34  ;;  %v1765_v40 = vpop.f32.mrb[53].mxu0  ;;  %v5236_v37 = vld [vmem:[%s6679_s9 + $0x20] sm:$0xff]  }
 0x907   :  { %v1766_v41 = vadd.f32 %v4299_v34, %v1765_v40  ;;  %v4784_v42 = vpop.f32.mrb[54].mxu0  ;;  %4793 = vmatprep.subr.bf16.mxu1 %v1844_v36 }
 0x908   :  { %v1777_v43 = vadd.f32 %v4784_v42, %v4299_v34  ;;  %v1768_v44 = vpop.f32.mrb[55].mxu0  ;;  %4794 = vmatpush3.bf16.msra.mxu1 %v1844_v36  ;;  %v1818_v47 = vmax.f32 %v1774_v38, 0.0  ;;  %v5235_v36 = vld [vmem:[%s6679_s9 + $0x18] sm:$0xff]   ;;  %v2138_v38 = vpack.c.bf16 %v4342_v18, %v4341_v16  ;;  %v5237_v42 = vld [vmem:[%s6679_s9 + $0x28] sm:$0xff]  }
 0x909   :  { %v1769_v45 = vadd.f32 %v4299_v34, %v1768_v44  ;;  %4795 = vmatprep.subr.bf16.mxu1 %v1845_v35  ;;  %v1816_v49 = vmax.f32 %v1766_v41, 0.0  ;;  %v5239_v44 = vld [vmem:[%s6679_s9 + $0x38] sm:$0xff]  }
 0x90a   :  { %v1819_v48 = vmax.f32 %v1777_v43, 0.0  ;;  %v5238_v43 = vld [vmem:[%s6679_s9 + $0x30] sm:$0xff]  }
 0x90b   :  { %v1817_v50 = vmax.f32 %v1769_v45, 0.0  ;;  %v2135_v45 = vld [vmem:[%s6700_s27] sm:$0xf] }
 0x90c   :  { %v1847_v51 = vpack.c.bf16 %v1819_v48, %v1818_v47  ;;  %4796 = vmatpush3.bf16.msra.mxu1 %v1845_v35  ;;  %v4343_v35 = vld [vmem:[%s6696_s29 + $0x68] sm:$0x3]  ;;  %v5391_v47 = vmov 0.0|0.0  }
 0x90d   :  { %v1846_v52 = vpack.c.bf16 %v1817_v50, %v1816_v49  ;;  %v4787_v54 = vpop.f32.mrb[56].mxu0  ;;  %v2139_v40 = vpack.c.bf16 %v4343_v35, %v4343_v35  ;;  %5011 = vmatprep.subr.bf16.mxu0 %v5391_v47 }
 0x90e   :  { %v1790_v55 = vadd.f32 %v4787_v54, %v4299_v34  ;;  %v1781_v56 = vpop.f32.mrb[57].mxu0 }
 0x90f   :  { %v1782_v57 = vadd.f32 %v4299_v34, %v1781_v56  ;;  %v4788_v58 = vpop.f32.mrb[58].mxu0  ;;  %4797 = vmatprep.subr.bf16.mxu1 %v1846_v52  ;;  %v2150_v41 = vsel %vm94_vm1, %v2139_v40, 0 }
 0x910   :  { %v1793_v60 = vadd.f32 %v4788_v58, %v4299_v34  ;;  %v1784_v61 = vpop.f32.mrb[59].mxu0  ;;  %4798 = vmatpush3.bf16.msra.mxu1 %v1846_v52  ;;  %v1822_v15 = vmax.f32 %v1790_v55, 0.0 }
 0x911   :  { %v1785_v7 = vadd.f32 %v4299_v34, %v1784_v61  ;;  %4799 = vmatprep.subr.bf16.mxu1 %v1847_v51  ;;  %v1820_v19 = vmax.f32 %v1782_v57, 0.0 }
 0x912   :  { %v1823_v17 = vmax.f32 %v1793_v60, 0.0 }
 0x913   :  { %v1821_v20 = vmax.f32 %v1785_v7, 0.0 }
 0x914   :  { %v1849_v21 = vpack.c.bf16 %v1823_v17, %v1822_v15  ;;  %4800 = vmatpush3.bf16.msra.mxu1 %v1847_v51 }
 0x915   :  { %v1848_v22 = vpack.c.bf16 %v1821_v20, %v1820_v19  ;;  %v4791_v23 = vpop.f32.mrb[60].mxu0 }
 0x916   :  { %v1806_v24 = vadd.f32 %v4791_v23, %v4299_v34  ;;  %v1797_v26 = vpop.f32.mrb[61].mxu0 }
 0x917   :  { %v1798_v25 = vadd.f32 %v4299_v34, %v1797_v26  ;;  %v4792_v27 = vpop.f32.mrb[62].mxu0  ;;  %4801 = vmatprep.subr.bf16.mxu1 %v1848_v22 }
 0x918   :  { %v1809_v28 = vadd.f32 %v4792_v27, %v4299_v34  ;;  %v1800_v29 = vpop.f32.mrb[63].mxu0  ;;  %4802 = vmatpush3.bf16.msra.mxu1 %v1848_v22  ;;  %v1826_v31 = vmax.f32 %v1806_v24, 0.0  ;;  %v2144_v27 = vpop.permute.xlu1 %2143 }
 0x919   :  { %v1801_v30 = vadd.f32 %v4299_v34, %v1800_v29  ;;  %4803 = vmatprep.subr.bf16.mxu1 %v1849_v21  ;;  %v1824_v33 = vmax.f32 %v1798_v25, 0.0  ;;  %v5233_v34 = vld [vmem:[%s6679_s9 + $0x8] sm:$0xff]  }
 0x91a   :  { %v1827_v32 = vmax.f32 %v1809_v28, 0.0 }
 0x91b   :  { %v1825_v63 = vmax.f32 %v1801_v30, 0.0 }
 0x91c   :  { %v1851_v2 = vpack.c.bf16 %v1827_v32, %v1826_v31  ;;  %4804 = vmatpush3.bf16.msra.mxu1 %v1849_v21 }
 0x91d   :  { %v1850_v3 = vpack.c.bf16 %v1825_v63, %v1824_v33  ;;  %v5385_v63 = vld.sshfl [vmem:[%s6702_s0] sm:$0xff pattern:$0x76325410] }
 0x91e   :  { %v2238_v5 = vand.u32 %v5385_v63, %v5670_v46 }
 0x91f   :  { %4805 = vmatprep.subr.bf16.mxu1 %v1850_v3 }
 0x920   :  { %4806 = vmatpush3.bf16.msra.mxu1 %v1850_v3 }
 0x921   :  { %4807 = vmatprep.subr.bf16.mxu1 %v1851_v2 }
 0x924   :  { %4808 = vmatpush3.bf16.msra.mxu1 %v1851_v2  ;;  %v2232_v2 = vcombine.high %v5385_v63, %v5385_v63  ;;  %v5255_v63 = vld [vmem:[%s6667_s12 + $0x50] ss:$8 sps:$4 sm:$0xff]  }
 0x925   :  { %4860 = vmatprep.subr.bf16.mxu1 %v5386_v0 }
 0x926   :  { %v2241_v3 = vand.u32 %v2232_v2, %v5670_v46  ;;  %v2194_v46 = vld [vmem:[%s6668_s11] sm:$0xf]  ;;  %v5260_v2 = vld [vmem:[%s6667_s12 + $0x64] ss:$8 sps:$4 sm:$0xff]  }
 0x927   :  { %4810 = vmatmul.mubr.bf16.vlgmr.msra.gmra.mrb[16].mxu1 %v5233_v34  ;;  %v6196_v34 = vpop.permute.xlu0 %2933  ;;  %v2211_v16 = vrot.slane %v2194_v46, %v156_v12 }
 0x928   :  { %4813 = vmatprep.mubr.bf16.mxu1 %v5234_v8  ;;  %4861 = vmatpush3.bf16.msra.mxu1 %v2136_v10 }
 0x929   :  { %4862 = vmatprep.subr.bf16.mxu1 %v5386_v0 }
 0x92b   :  { %v6198_v8 = vpop.permute.xlu0 %2943 }
 0x92c   :  { %4863 = vmatpush3.bf16.msra.mxu1 %v2137_v14  ;;  %v2207_v14 = vrot.slane %v2194_v46, %v152_v9 }
 0x92d   :  { %4864 = vmatprep.subr.bf16.mxu1 %v5386_v0 }
 0x92f   :  { %4814 = vmatmul.mubr.bf16.gmra.mrb[20].mxu1 %v5235_v36  ;;  %v6200_v10 = vpop.permute.xlu0 %3451 }
 0x930   :  { %4817 = vmatprep.mubr.bf16.mxu1 %v5236_v37  ;;  %4865 = vmatpush3.bf16.msra.mxu1 %v2138_v38 }
 0x931   :  { %4866 = vmatprep.subr.bf16.mxu1 %v5386_v0 }
 0x933   :  { %v6202_v11 = vpop.permute.xlu0 %3461 }
 0x934   :  { %4867 = vmatpush3.bf16.msra.mxu1 %v2150_v41 }
 0x935   :  { %2290 = vmatprep.subr.bf16.mxu1 %v5675_v53 }
 0x937   :  { %4818 = vmatmul.mubr.bf16.gmra.mrb[24].mxu1 %v5237_v42  ;;  %v6207_v13 = vpop.permute.xlu0 %3471 }
 0x938   :  { %4821 = vmatprep.mubr.bf16.mxu1 %v5238_v43 }
 0x93b   :  { %v6213_v37 = vpop.permute.xlu0 %3481 }
 0x93f   :  { %4822 = vmatmul.mubr.bf16.gmra.mrb[28].mxu1 %v5239_v44 }
 0x940   :  { %4868 = vmatprep.mubr.msk.bf16.mxu1 %vm5387_vm0, %v5386_v0 }
 0x947   :  { %4869 = vmatmul.mubr.msk.bf16.vlgmr.msra.gmra.mrb[32].mxu1 %vm90_vm2, %v2135_v45 }
 0x948   :  { %2322 = vmatprep.mubr.bf16.mxu1 %v5388_v6  ;;  %2291 = vmatpush1.bf16.msra.mxu1 %v5679_v59 }
 0x9fa   :  { %v4811_v48 = vpop.f32.mrb[16].mxu1 }
 0x9fb   :  { %v1934_v49 = vpop.f32.mrb[17].mxu1 }
 0x9fc   :  { %v4812_v50 = vpop.f32.mrb[18].mxu1 }
 0x9fd   :  { %v5016_v51 = vpack.c.bf16 %v4812_v50, %v4811_v48  ;;  %v1937_v52 = vpop.f32.mrb[19].mxu1 }
 0x9fe   :  { %v5012_v55 = vpack.c.bf16 %v1937_v52, %v1934_v49  ;;  %v6216_v49 = vpop.permute.xlu0 %3491 }
 0xa00   :  { %5014 = vmatpush3.bf16.xpose.msk.msra.mxu0 %vm6155_vm10, %v5012_v55 }
 0xa01   :  { %5015 = vmatprep.subr.bf16.mxu0 %v5391_v47 }
 0xa02   :  { %v4815_v53 = vpop.f32.mrb[20].mxu1  ;;  %v6224_v9 = vpop.permute.xlu0 %3501 }
 0xa03   :  { %v1950_v59 = vpop.f32.mrb[21].mxu1 }
 0xa04   :  { %v4816_v56 = vpop.f32.mrb[22].mxu1 }
 0xa05   :  { %v5024_v57 = vpack.c.bf16 %v4816_v56, %v4815_v53  ;;  %v1953_v58 = vpop.f32.mrb[23].mxu1  ;;  %v2203_v56 = vrot.slane %v2194_v46, %v5693_v1 }
 0xa06   :  { %v5020_v60 = vpack.c.bf16 %v1953_v58, %v1950_v59  ;;  %v6226_v12 = vpop.permute.xlu0 %3511  ;;  %v2199_v59 = vrot.slane %v2194_v46, %v5687_v62  ;;  %v5266_v46 = vld [vmem:[%s6667_s12 + $0x84] ss:$8 sps:$4 sm:$0xff]  }
 0xa08   :  { %5018 = vmatpush3.bf16.xpose.msk.msra.mxu0 %vm6155_vm10, %v5016_v51 }
 0xa09   :  { %5019 = vmatprep.subr.bf16.mxu0 %v5391_v47 }
 0xa0a   :  { %v4819_v61 = vpop.f32.mrb[24].mxu1  ;;  %v6228_v50 = vpop.permute.xlu0 %3521 }
 0xa0b   :  { %v1966_v7 = vpop.f32.mrb[25].mxu1 }
 0xa0c   :  { %v4820_v15 = vpop.f32.mrb[26].mxu1 }
 0xa0d   :  { %v5032_v17 = vpack.c.bf16 %v4820_v15, %v4819_v61  ;;  %v1969_v19 = vpop.f32.mrb[27].mxu1 }
 0xa0e   :  { %v5028_v20 = vpack.c.bf16 %v1969_v19, %v1966_v7  ;;  %v2002_v51 = vpop.permute.xlu0 %2001 }
 0xa10   :  { %5022 = vmatpush3.bf16.xpose.msk.msra.mxu0 %vm6155_vm10, %v5020_v60 }
 0xa11   :  { %5023 = vmatprep.subr.bf16.mxu0 %v5391_v47 }
 0xa12   :  { %v4823_v21 = vpop.f32.mrb[28].mxu1 }
 0xa13   :  { %v1982_v22 = vpop.f32.mrb[29].mxu1 }
 0xa14   :  { %v4824_v23 = vpop.f32.mrb[30].mxu1 }
 0xa15   :  { %v5040_v24 = vpack.c.bf16 %v4824_v23, %v4823_v21  ;;  %v1985_v26 = vpop.f32.mrb[31].mxu1 }
 0xa16   :  { %v5036_v25 = vpack.c.bf16 %v1985_v26, %v1982_v22  ;;  %v5242_v22 = vld [vmem:[%s6667_s12 + $0x4] ss:$8 sps:$4 sm:$0xff]   ;;  %v5245_v26 = vld [vmem:[%s6667_s12 + $0x14] ss:$8 sps:$4 sm:$0xff]  }
 0xa18   :  { %5026 = vmatpush3.bf16.xpose.msk.msra.mxu0 %vm6155_vm10, %v5024_v57 }
 0xa19   :  { %5027 = vmatprep.subr.bf16.mxu0 %v5391_v47 }
 0xa1a   :  { %v2186_v28 = vpop.f32.mrb[32].mxu1 }
 0xa1b   :  { %v2187_v29 = vadd.f32 %v2186_v28, %v2144_v27  ;;  %v4870_v30 = vpop.f32.mrb[33].mxu1  ;;  %v5248_v27 = vld [vmem:[%s6667_s12 + $0x24] ss:$8 sps:$4 sm:$0xff]   ;;  %v5246_v28 = vld [vmem:[%s6667_s12 + $0x20] ss:$8 sps:$4 sm:$0xff]  }
 0xa1c   :  { %v2189_v31 = vpop.f32.mrb[34].mxu1  ;;  %v5249_v30 = vld [vmem:[%s6667_s12 + $0x30] ss:$8 sps:$4 sm:$0xff]  }
 0xa1d   :  { %v2192_v32 = vpack.c.bf16 %v2187_v29, %v2187_v29  ;;  %v4871_v33 = vpop.f32.mrb[35].mxu1  ;;  %v5251_v29 = vld [vmem:[%s6667_s12 + $0x34] ss:$8 sps:$4 sm:$0xff]   ;;  %v5254_v31 = vld [vmem:[%s6667_s12 + $0x44] ss:$8 sps:$4 sm:$0xff]  }
 0xa1e   :  { %v5257_v33 = vld [vmem:[%s6667_s12 + $0x54] ss:$8 sps:$4 sm:$0xff]  }
 0xa1f   :  { %4346 = vmatmul.mubr.msk.bf16.vlgmr.msra.gmra.mrb[36].mxu1 %vm180_vm4, %v2192_v32 }
 0xa20   :  { %5030 = vmatpush3.bf16.xpose.msk.msra.mxu0 %vm6155_vm10, %v5028_v20  ;;  %2428 = vmatprep.mubr.bf16.mxu1 %v5388_v6 }
 0xa21   :  { %5031 = vmatprep.subr.bf16.mxu0 %v5391_v47 }
 0xa28   :  { %5034 = vmatpush3.bf16.xpose.msk.msra.mxu0 %vm6155_vm10, %v5032_v17 }
 0xa29   :  { %5035 = vmatprep.subr.bf16.mxu0 %v5391_v47 }
 0xa30   :  { %5038 = vmatpush3.bf16.xpose.msk.msra.mxu0 %vm6155_vm10, %v5036_v25  ;;  %v5243_v25 = vld [vmem:[%s6667_s12 + $0x10] ss:$8 sps:$4 sm:$0xff]  }
 0xa31   :  { %5039 = vmatprep.subr.bf16.mxu0 %v5391_v47 }
 0xa38   :  { %5042 = vmatpush3.bf16.xpose.msk.msra.mxu0 %vm6155_vm10, %v5040_v24  ;;  %v5240_v24 = vld [vmem:[%s6667_s12] ss:$8 sps:$4 sm:$0xff]  }
 0xa39   :  { %2249 = vmatprep.subr.bf16.mxu0 %v2241_v3  ;;  %v5258_v3 = vld [vmem:[%s6667_s12 + $0x60] ss:$8 sps:$4 sm:$0xff]  }
 0xa3f   :  { %4858 = vmatmul.mubr.msk.f32.vlgmr.msra.gmra.mrb[64].mxu0 %vm2004_vm9, %v1997_v4  ;;  %v5263_v4 = vld [vmem:[%s6667_s12 + $0x74] ss:$8 sps:$4 sm:$0xff]  }
 0xa40   :  { %2250 = vmatpush1.bf16.msra.mxu0 %v2238_v5  ;;  %2281 = vmatprep.mubr.bf16.mxu0 %v5388_v6  ;;  %v5261_v5 = vld [vmem:[%s6667_s12 + $0x70] ss:$8 sps:$4 sm:$0xff]  }
 0xa43   :  { %4345 = vmatmul.mubr.msk.bf16.vlgmr.msra.gmra.mrb[68].mxu0 %vm180_vm4, %v2192_v32  ;;  %v5252_v32 = vld [vmem:[%s6667_s12 + $0x40] ss:$8 sps:$4 sm:$0xff]  }
 0xa44   :  { %2387 = vmatprep.mubr.bf16.mxu0 %v5388_v6 }
 0xaf2   :  { %v2324_v18 = vpop.f32.mrb[36].mxu1 }
 0xaf3   :  { %v2325_v35 = vadd.f32 %v2324_v18, %v2207_v14  ;;  %v2326_v36 = vpop.f32.mrb[37].mxu1  ;;  %v5264_v14 = vld [vmem:[%s6667_s12 + $0x80] ss:$8 sps:$4 sm:$0xff]   ;;  %v5267_v18 = vld [vmem:[%s6667_s12 + $0x90] ss:$8 sps:$4 sm:$0xff]  }
 0xaf4   :  { %v2327_v38 = vadd.f32 %v2326_v36, %v2211_v16  ;;  %v2328_v40 = vpop.f32.mrb[38].mxu1  ;;  %v5269_v16 = vld [vmem:[%s6667_s12 + $0x94] ss:$8 sps:$4 sm:$0xff]   ;;  %v5270_v36 = vld [vmem:[%s6667_s12 + $0xa0] ss:$8 sps:$4 sm:$0xff]  }
 0xaf5   :  { %v2333_v41 = vmax.f32 %v2325_v35, 0.0  ;;  %v2329_v42 = vpop.f32.mrb[39].mxu1  ;;  %v5272_v35 = vld [vmem:[%s6667_s12 + $0xa4] ss:$8 sps:$4 sm:$0xff]   ;;  %v5273_v40 = vld [vmem:[%s6667_s12 + $0xb0] ss:$8 sps:$4 sm:$0xff]  }
 0xaf6   :  { %v2334_v43 = vmax.f32 %v2327_v38, 0.0  ;;  %v5275_v38 = vld [vmem:[%s6667_s12 + $0xb4] ss:$8 sps:$4 sm:$0xff]   ;;  %v5276_v42 = vld [vmem:[%s6667_s12 + $0xc0] ss:$8 sps:$4 sm:$0xff]  }
 0xaf7   :  { %v2338_v44 = vpack.c.bf16 %v2333_v41, %v2333_v41  ;;  %v5278_v41 = vld [vmem:[%s6667_s12 + $0xc4] ss:$8 sps:$4 sm:$0xff]  }
 0xaf8   :  { %v2339_v45 = vpack.c.bf16 %v2334_v43, %v2334_v43  ;;  %v5281_v43 = vld [vmem:[%s6667_s12 + $0xd4] ss:$8 sps:$4 sm:$0xff]  }
 0xaf9   :  { %v2350_v48 = vsel %vm294_vm5, %v2338_v44, 0  ;;  %v5279_v44 = vld [vmem:[%s6667_s12 + $0xd0] ss:$8 sps:$4 sm:$0xff]  }
 0xafa   :  { %4349 = vmatprep.subr.msk.bf16.mxu1 %vm294_vm5, %v2339_v45  ;;  %v5284_v45 = vld [vmem:[%s6667_s12 + $0xe4] ss:$8 sps:$4 sm:$0xff]  }
 0xafb   :  { %2397 = vmatpush1.bf16.msra.mxu1 %v2350_v48  ;;  %v5282_v48 = vld [vmem:[%s6667_s12 + $0xe0] ss:$8 sps:$4 sm:$0xff]  }
 0xafe   :  { %4350 = vmatmul.mubr.msk.bf16.vlgmr.msra.gmra.mrb[40].mxu1 %vm290_vm6, %v2335_v39 }
 0xaff   :  { %3005 = vmatprep.mubr.bf16.mxu1 %v5388_v6 }
 0xb12   :  { %v2122_v52 = vpop.f32.mrb[64].mxu0 }
 0xb13   :  { %v2123_v55 = vadd.f32 %v2122_v52, %v2002_v51  ;;  %v4859_v53 = vpop.f32.mrb[65].mxu0  ;;  %v5285_v51 = vld [vmem:[%s6667_s12 + $0xf0] ss:$8 sps:$4 sm:$0xff]   ;;  %v5290_v52 = vld [vmem:[%s6667_s12 + $0x104] ss:$8 sps:$4 sm:$0xff]  }
 0xb15   :  { %2126 = vst [vmem:[%s6682_s22] sm:$0x7] %v2123_v55 }
 0xb16   :  { %v2283_v57 = vpop.f32.mrb[68].mxu0 }
 0xb17   :  { %v2284_v58 = vadd.f32 %v2283_v57, %v2199_v59  ;;  %v2285_v60 = vpop.f32.mrb[69].mxu0 }
 0xb18   :  { %v2286_v61 = vadd.f32 %v2285_v60, %v2203_v56  ;;  %v2287_v7 = vpop.f32.mrb[70].mxu0 }
 0xb19   :  { %v2331_v15 = vmax.f32 %v2284_v58, 0.0  ;;  %v2288_v17 = vpop.f32.mrb[71].mxu0  ;;  %v5288_v7 = vld [vmem:[%s6667_s12 + $0x100] ss:$8 sps:$4 sm:$0xff]  }
 0xb1a   :  { %v2332_v19 = vmax.f32 %v2286_v61, 0.0 }
 0xb1b   :  { %v2336_v20 = vpack.c.bf16 %v2331_v15, %v2331_v15 }
 0xb1c   :  { %v2337_v21 = vpack.c.bf16 %v2332_v19, %v2332_v19 }
 0xb1d   :  { %v2344_v23 = vsel %vm294_vm5, %v2336_v20, 0  ;;  %v5293_v20 = vld [vmem:[%s6667_s12 + $0x114] ss:$8 sps:$4 sm:$0xff]  }
 0xb1e   :  { %4347 = vmatprep.subr.msk.bf16.mxu0 %vm294_vm5, %v2337_v21  ;;  %v5291_v21 = vld [vmem:[%s6667_s12 + $0x110] ss:$8 sps:$4 sm:$0xff]  }
 0xb1f   :  { %2356 = vmatpush1.bf16.msra.mxu0 %v2344_v23  ;;  %v5294_v23 = vld [vmem:[%s6667_s12 + $0x120] ss:$8 sps:$4 sm:$0xff]  }
 0xb20   :  { %2837 = vmatprep.subr.bf16.mxu0 %v5242_v22  ;;  %v5296_v22 = vld [vmem:[%s6667_s12 + $0x124] ss:$8 sps:$4 sm:$0xff]  }
 0xb22   :  { %4348 = vmatmul.mubr.msk.bf16.vlgmr.msra.gmra.mrb[72].mxu0 %vm290_vm6, %v2335_v39  ;;  %v5287_v39 = vld [vmem:[%s6667_s12 + $0xf4] ss:$8 sps:$4 sm:$0xff]  }
 0xb23   :  { %2838 = vmatpush1.bf16.msra.mxu0 %v5240_v24  ;;  %v5299_v24 = vld [vmem:[%s6667_s12 + $0x134] ss:$8 sps:$4 sm:$0xff]  }
 0xb24   :  { %2839 = vmatprep.subr.bf16.mxu0 %v5245_v26  ;;  %v5297_v26 = vld [vmem:[%s6667_s12 + $0x130] ss:$8 sps:$4 sm:$0xff]  }
 0xb27   :  { %2840 = vmatpush1.bf16.msra.mxu0 %v5243_v25  ;;  %v5302_v25 = vld [vmem:[%s6667_s12 + $0x144] ss:$8 sps:$4 sm:$0xff]  }
 0xb28   :  { %2841 = vmatprep.subr.bf16.mxu0 %v5248_v27  ;;  %v5300_v27 = vld [vmem:[%s6667_s12 + $0x140] ss:$8 sps:$4 sm:$0xff]  }
 0xb2b   :  { %2842 = vmatpush1.bf16.msra.mxu0 %v5246_v28  ;;  %v5305_v28 = vld [vmem:[%s6667_s12 + $0x154] ss:$8 sps:$4 sm:$0xff]  }
 0xb2c   :  { %2843 = vmatprep.subr.bf16.mxu0 %v5251_v29  ;;  %v5303_v29 = vld [vmem:[%s6667_s12 + $0x150] ss:$8 sps:$4 sm:$0xff]  }
 0xb2f   :  { %2844 = vmatpush1.bf16.msra.mxu0 %v5249_v30  ;;  %v5308_v30 = vld [vmem:[%s6667_s12 + $0x164] ss:$8 sps:$4 sm:$0xff]  }
 0xb30   :  { %2845 = vmatprep.subr.bf16.mxu0 %v5254_v31  ;;  %v5306_v31 = vld [vmem:[%s6667_s12 + $0x160] ss:$8 sps:$4 sm:$0xff]  }
 0xb33   :  { %2846 = vmatpush1.bf16.msra.mxu0 %v5252_v32  ;;  %v5311_v32 = vld [vmem:[%s6667_s12 + $0x174] ss:$8 sps:$4 sm:$0xff]  }
 0xb34   :  { %2847 = vmatprep.subr.bf16.mxu0 %v5257_v33  ;;  %v5309_v33 = vld [vmem:[%s6667_s12 + $0x170] ss:$8 sps:$4 sm:$0xff]  }
 0xb37   :  { %2848 = vmatpush1.bf16.msra.mxu0 %v5255_v63  ;;  %v5314_v63 = vld [vmem:[%s6667_s12 + $0x184] ss:$8 sps:$4 sm:$0xff]  }
 0xb38   :  { %2849 = vmatprep.subr.bf16.mxu0 %v5260_v2  ;;  %v5312_v2 = vld [vmem:[%s6667_s12 + $0x180] ss:$8 sps:$4 sm:$0xff]  }
 0xb3b   :  { %2850 = vmatpush1.bf16.msra.mxu0 %v5258_v3  ;;  %v5317_v3 = vld [vmem:[%s6667_s12 + $0x194] ss:$8 sps:$4 sm:$0xff]  }
 0xb3c   :  { %2851 = vmatprep.subr.bf16.mxu0 %v5263_v4  ;;  %v5315_v4 = vld [vmem:[%s6667_s12 + $0x190] ss:$8 sps:$4 sm:$0xff]  }
 0xb3f   :  { %2852 = vmatpush1.bf16.msra.mxu0 %v5261_v5  ;;  %v5320_v5 = vld [vmem:[%s6667_s12 + $0x1a4] ss:$8 sps:$4 sm:$0xff]  }
 0xb40   :  { %2853 = vmatprep.subr.bf16.mxu0 %v5266_v46  ;;  %v5318_v46 = vld [vmem:[%s6667_s12 + $0x1a0] ss:$8 sps:$4 sm:$0xff]  }
 0xb43   :  { %2854 = vmatpush1.bf16.msra.mxu0 %v5264_v14  ;;  %v5323_v14 = vld [vmem:[%s6667_s12 + $0x1b4] ss:$8 sps:$4 sm:$0xff]  }
 0xb44   :  { %2855 = vmatprep.subr.bf16.mxu0 %v5269_v16  ;;  %v5321_v16 = vld [vmem:[%s6667_s12 + $0x1b0] ss:$8 sps:$4 sm:$0xff]  }
 0xb47   :  { %2856 = vmatpush1.bf16.msra.mxu0 %v5267_v18  ;;  %v5326_v18 = vld [vmem:[%s6667_s12 + $0x1c4] ss:$8 sps:$4 sm:$0xff]  }
 0xb48   :  { %2857 = vmatprep.subr.bf16.mxu0 %v5272_v35  ;;  %v5324_v35 = vld [vmem:[%s6667_s12 + $0x1c0] ss:$8 sps:$4 sm:$0xff]  }
 0xb4b   :  { %2858 = vmatpush1.bf16.msra.mxu0 %v5270_v36  ;;  %v5329_v36 = vld [vmem:[%s6667_s12 + $0x1d4] ss:$8 sps:$4 sm:$0xff]  }
 0xb4c   :  { %2859 = vmatprep.subr.bf16.mxu0 %v5275_v38  ;;  %v5327_v38 = vld [vmem:[%s6667_s12 + $0x1d0] ss:$8 sps:$4 sm:$0xff]  }
 0xb4f   :  { %2860 = vmatpush1.bf16.msra.mxu0 %v5273_v40  ;;  %v5332_v40 = vld [vmem:[%s6667_s12 + $0x1e4] ss:$8 sps:$4 sm:$0xff]  }
 0xb50   :  { %2861 = vmatprep.subr.bf16.mxu0 %v5278_v41  ;;  %v5330_v41 = vld [vmem:[%s6667_s12 + $0x1e0] ss:$8 sps:$4 sm:$0xff]  }
 0xb53   :  { %2862 = vmatpush1.bf16.msra.mxu0 %v5276_v42  ;;  %v5335_v42 = vld [vmem:[%s6667_s12 + $0x1f4] ss:$8 sps:$4 sm:$0xff]  }
 0xb54   :  { %2863 = vmatprep.subr.bf16.mxu0 %v5281_v43  ;;  %v5333_v43 = vld [vmem:[%s6667_s12 + $0x1f0] ss:$8 sps:$4 sm:$0xff]  }
 0xb57   :  { %2864 = vmatpush1.bf16.msra.mxu0 %v5279_v44 }
 0xb58   :  { %2865 = vmatprep.subr.bf16.mxu0 %v5284_v45  ;;  %v2505_v45 = vld [vmem:[%s6672_s13] sm:$0x3] }
 0xb5b   :  { %2866 = vmatpush1.bf16.msra.mxu0 %v5282_v48  ;;  %v2510_v48 = vrot.slane %v2505_v45, %v5687_v62  ;;  %v5336_v62 = vld [vmem:[%s6670_s3] sm:$0xff]  }
 0xb5c   :  { %2867 = vmatprep.subr.bf16.mxu0 %v5287_v39  ;;  %v2514_v39 = vrot.slane %v2505_v45, %v5693_v1  ;;  %v5339_v1 = vld [vmem:[%s6671_s14] sm:$0xff]  }
 0xb5f   :  { %2868 = vmatpush1.bf16.msra.mxu0 %v5285_v51 }
 0xb60   :  { %2878 = vmatprep.subr.bf16.mxu0 %v5290_v52 }
 0xbd1   :  { %v6337_v55 = vpop.f32.mrb[40].mxu1 }
 0xbd2   :  { %v2432_v53 = vpop.f32.mrb[41].mxu1  ;;  %v2439_v44 = vpack.c.bf16 %v6337_v55, %v6337_v55  ;;  %v5338_v55 = vld [vmem:[%s6671_s14 + $0x40] sm:$0xff]  }
 0xbd3   :  { %v2434_v59 = vpop.f32.mrb[42].mxu1  ;;  %v2440_v15 = vpack.c.bf16 %v2432_v53, %v2432_v53 }
 0xbd4   :  { %v2435_v56 = vpop.f32.mrb[43].mxu1 }
 0xbf5   :  { %v2389_v57 = vpop.f32.mrb[72].mxu0 }
 0xbf6   :  { %v2391_v58 = vpop.f32.mrb[73].mxu0  ;;  %v2437_v17 = vpack.c.bf16 %v2389_v57, %v2389_v57 }
 0xbf7   :  { %v2438_v60 = vpack.c.bf16 %v2391_v58, %v2391_v58  ;;  %v2393_v61 = vpop.f32.mrb[74].mxu0 }
 0xbf8   :  { %v2394_v19 = vpop.f32.mrb[75].mxu0 }
 0xbf9   :  { %2869 = vmatprep.mubr.bf16.mxu0 %v2438_v60  ;;  %v5341_v19 = vld [vmem:[%s6671_s14 + $0x8] sm:$0xff]  }
 0xbfa   :  { %2870 = vmatmul.mubr.bf16.vlgmr.msra.gmra.mrb[76].mxu0 %v2437_v17  ;;  %v5340_v17 = vld [vmem:[%s6671_s14 + $0x48] sm:$0xff]  }
 0xbfb   :  { %2879 = vmatpush1.bf16.msra.mxu0 %v5288_v7  ;;  %2910 = vmatprep.mubr.bf16.mxu0 %v2440_v15 }
 0xbfc   :  { %2880 = vmatprep.subr.bf16.mxu0 %v5293_v20  ;;  %v5342_v20 = vld [vmem:[%s6671_s14 + $0x50] sm:$0xff]  }
 0xbff   :  { %2881 = vmatpush1.bf16.msra.mxu0 %v5291_v21  ;;  %v5337_v21 = vld [vmem:[%s6670_s3 + $0x8] sm:$0xff]  }
 0xc00   :  { %2882 = vmatprep.subr.bf16.mxu0 %v5296_v22  ;;  %v5343_v22 = vld [vmem:[%s6671_s14 + $0x10] sm:$0xff]  }
 0xc03   :  { %2883 = vmatpush1.bf16.msra.mxu0 %v5294_v23  ;;  %v5345_v23 = vld [vmem:[%s6671_s14 + $0x18] sm:$0xff]  }
 0xc04   :  { %2884 = vmatprep.subr.bf16.mxu0 %v5299_v24  ;;  %v5346_v24 = vld [vmem:[%s6671_s14 + $0x60] sm:$0xff]  }
 0xc07   :  { %2885 = vmatpush1.bf16.msra.mxu0 %v5297_v26  ;;  %v5347_v26 = vld [vmem:[%s6671_s14 + $0x20] sm:$0xff]  }
 0xc08   :  { %2886 = vmatprep.subr.bf16.mxu0 %v5302_v25  ;;  %v5348_v25 = vld [vmem:[%s6671_s14 + $0x68] sm:$0xff]  }
 0xc0b   :  { %2887 = vmatpush1.bf16.msra.mxu0 %v5300_v27  ;;  %v5349_v27 = vld [vmem:[%s6671_s14 + $0x28] sm:$0xff]  }
 0xc0c   :  { %2888 = vmatprep.subr.bf16.mxu0 %v5305_v28  ;;  %v5350_v28 = vld [vmem:[%s6671_s14 + $0x70] sm:$0xff]  }
 0xc0f   :  { %2889 = vmatpush1.bf16.msra.mxu0 %v5303_v29  ;;  %v5351_v29 = vld [vmem:[%s6671_s14 + $0x30] sm:$0xff]  }
 0xc10   :  { %2890 = vmatprep.subr.bf16.mxu0 %v5308_v30  ;;  %v5352_v30 = vld [vmem:[%s6671_s14 + $0x78] sm:$0xff]  }
 0xc13   :  { %2891 = vmatpush1.bf16.msra.mxu0 %v5306_v31  ;;  %v5353_v31 = vld [vmem:[%s6671_s14 + $0x38] sm:$0xff]  }
 0xc14   :  { %2892 = vmatprep.subr.bf16.mxu0 %v5311_v32 }
 0xc17   :  { %2893 = vmatpush1.bf16.msra.mxu0 %v5309_v33 }
 0xc18   :  { %2894 = vmatprep.subr.bf16.mxu0 %v5314_v63  ;;  %v2939_v63 = vpop.permute.xlu1 %2938 }
 0xc1b   :  { %2895 = vmatpush1.bf16.msra.mxu0 %v5312_v2 }
 0xc1c   :  { %2896 = vmatprep.subr.bf16.mxu0 %v5317_v3 }
 0xc1f   :  { %2897 = vmatpush1.bf16.msra.mxu0 %v5315_v4 }
 0xc20   :  { %2898 = vmatprep.subr.bf16.mxu0 %v5320_v5 }
 0xc23   :  { %2899 = vmatpush1.bf16.msra.mxu0 %v5318_v46 }
 0xc24   :  { %2900 = vmatprep.subr.bf16.mxu0 %v5323_v14 }
 0xc27   :  { %2901 = vmatpush1.bf16.msra.mxu0 %v5321_v16 }
 0xc28   :  { %2902 = vmatprep.subr.bf16.mxu0 %v5326_v18 }
 0xc2b   :  { %2903 = vmatpush1.bf16.msra.mxu0 %v5324_v35 }
 0xc2c   :  { %2904 = vmatprep.subr.bf16.mxu0 %v5329_v36 }
 0xc2f   :  { %2905 = vmatpush1.bf16.msra.mxu0 %v5327_v38  ;;  %v2949_v38 = vpop.permute.xlu1 %2948 }
 0xc30   :  { %2906 = vmatprep.subr.bf16.mxu0 %v5332_v40 }
 0xc33   :  { %2907 = vmatpush1.bf16.msra.mxu0 %v5330_v41 }
 0xc34   :  { %2908 = vmatprep.subr.bf16.mxu0 %v5335_v42 }
 0xc37   :  { %2909 = vmatpush1.bf16.msra.mxu0 %v5333_v43 }
 0xc3a   :  { %2911 = vmatmul.mubr.bf16.vlgmr.msra.gmra.mrb[76].mxu0 %v2439_v44 }
 0xd0d   :  { %v2912_v51 = vpop.f32.mrb[76].mxu0 }
 0xd0e   :  { %v5077_v52 = vadd.f32 %v2912_v51, %v2510_v48  ;;  %v2914_v53 = vpop.f32.mrb[77].mxu0 }
 0xd0f   :  { %v5078_v59 = vadd.f32 %v2914_v53, %v2514_v39  ;;  %v2916_v56 = vpop.f32.mrb[78].mxu0 }
 0xd10   :  { %v2919_v57 = vmax.f32 %v5077_v52, 0.0  ;;  %v2917_v58 = vpop.f32.mrb[79].mxu0  ;;  %v4420_v52 = vld [vmem:[%s6675_s15] ss:$0 sm:$0xff] }
 0xd11   :  { %v2920_v60 = vmax.f32 %v5078_v59, 0.0 }
 0xd12   :  { %v2925_v61 = vpack.c.bf16 %v2919_v57, %v2919_v57 }
 0xd13   :  { %v2926_v7 = vpack.c.bf16 %v2920_v60, %v2920_v60 }
 0xd14   :  { %v2968_v15 = vsel %vm294_vm5, %v2925_v61, 0 }
 0xd15   :  { %4417 = vmatprep.subr.msk.bf16.mxu1 %vm294_vm5, %v2926_v7 }
 0xd16   :  { %2974 = vmatpush1.bf16.msra.mxu1 %v2968_v15 }
 0xd17   :  { %4612 = vmatprep.subr.bf16.mxu1 %v5338_v55 }
 0xd19   :  { %4418 = vmatmul.mubr.msk.bf16.vlgmr.msra.gmra.mrb[44].mxu1 %vm290_vm6, %v5336_v62 }
 0xd1a   :  { %3015 = vmatprep.mubr.bf16.mxu1 %v5388_v6  ;;  %4613 = vmatpush3.bf16.msra.mxu1 %v5339_v1  ;;  %v5344_v6 = vld [vmem:[%s6671_s14 + $0x58] sm:$0xff]  }
 0xd1b   :  { %4614 = vmatprep.subr.bf16.mxu1 %v5340_v17 }
 0xd1e   :  { %4615 = vmatpush3.bf16.msra.mxu1 %v5341_v19 }
 0xd1f   :  { %4616 = vmatprep.subr.bf16.mxu1 %v5342_v20 }
 0xd21   :  { %4419 = vmatmul.mubr.msk.bf16.gmra.mrb[48].mxu1 %vm290_vm6, %v5337_v21 }
 0xd22   :  { %4617 = vmatpush3.bf16.msra.mxu1 %v5343_v22 }
 0xd23   :  { %4618 = vmatprep.subr.bf16.mxu1 %v5344_v6 }
 0xd26   :  { %4619 = vmatpush3.bf16.msra.mxu1 %v5345_v23 }
 0xd27   :  { %4620 = vmatprep.subr.bf16.mxu1 %v5346_v24 }
 0xd2a   :  { %4621 = vmatpush3.bf16.msra.mxu1 %v5347_v26  ;;  %v5356_v26 = vld [vmem:[%s6674_s16] sm:$0xff]  }
 0xd2b   :  { %4622 = vmatprep.subr.bf16.mxu1 %v5348_v25  ;;  %v5355_v25 = vld [vmem:[%s6673_s8 + $0x8] sm:$0xff]  }
 0xd2e   :  { %4623 = vmatpush3.bf16.msra.mxu1 %v5349_v27  ;;  %v5357_v27 = vld [vmem:[%s6674_s16 + $0x8] sm:$0xff]  }
 0xd2f   :  { %4624 = vmatprep.subr.bf16.mxu1 %v5350_v28  ;;  %v5358_v28 = vld [vmem:[%s6674_s16 + $0x10] sm:$0xff]  }
 0xd32   :  { %4625 = vmatpush3.bf16.msra.mxu1 %v5351_v29  ;;  %v5359_v29 = vld [vmem:[%s6674_s16 + $0x18] sm:$0xff]  }
 0xd33   :  { %4626 = vmatprep.subr.bf16.mxu1 %v5352_v30  ;;  %v5360_v30 = vld [vmem:[%s6674_s16 + $0x20] sm:$0xff]  }
 0xd36   :  { %4627 = vmatpush3.bf16.msra.mxu1 %v5353_v31  ;;  %v5361_v31 = vld [vmem:[%s6674_s16 + $0x28] sm:$0xff]  }
 0xdec   :  { %v3007_v32 = vpop.f32.mrb[44].mxu1 }
 0xded   :  { %v3009_v33 = vpop.f32.mrb[45].mxu1  ;;  %v3008_v3 = vadd.f32 %v3007_v32, %v6196_v34  ;;  %v5362_v32 = vld [vmem:[%s6674_s16 + $0x30] sm:$0xff]  }
 0xdee   :  { %v3011_v2 = vpop.f32.mrb[46].mxu1  ;;  %v3010_v46 = vadd.f32 %v3009_v33, %v6196_v34  ;;  %v5354_v34 = vld [vmem:[%s6673_s8] sm:$0xff]   ;;  %v5363_v33 = vld [vmem:[%s6674_s16 + $0x38] sm:$0xff]  }
 0xdef   :  { %v3012_v4 = vadd.f32 %v3011_v2, %v2939_v63  ;;  %v3013_v5 = vpop.f32.mrb[47].mxu1 }
 0xdf0   :  { %v3014_v14 = vadd.f32 %v3013_v5, %v2939_v63 }
 0xdf1   :  { %v3026_v16 = vpack.c.bf16 %v3012_v4, %v3008_v3 }
 0xdf2   :  { %v3027_v18 = vpack.c.bf16 %v3014_v14, %v3010_v46  ;;  %v5364_v14 = vld [vmem:[%s6676_s5] sm:$0xff]  }
 0xdf4   :  { %v3017_v35 = vpop.f32.mrb[48].mxu1  ;;  %3197 = vmatprep.mubr.bf16.mxu1 %v3027_v18 }
 0xdf5   :  { %v3019_v36 = vpop.f32.mrb[49].mxu1  ;;  %3198 = vmatmul.mubr.bf16.vlgmr.msra.gmra.mrb[52].mxu1 %v3026_v16  ;;  %v3018_v41 = vadd.f32 %v3017_v35, %v6198_v8  ;;  %v4441_v16 = vld [vmem:[%s6678_s17] ss:$0 sm:$0xff] }
 0xdf6   :  { %v3021_v40 = vpop.f32.mrb[50].mxu1  ;;  %v3020_v44 = vadd.f32 %v3019_v36, %v6198_v8 }
 0xdf7   :  { %v3022_v42 = vadd.f32 %v3021_v40, %v2949_v38  ;;  %v3023_v43 = vpop.f32.mrb[51].mxu1 }
 0xdf8   :  { %v3024_v45 = vadd.f32 %v3023_v43, %v2949_v38 }
 0xdf9   :  { %v3028_v48 = vpack.c.bf16 %v3022_v42, %v3018_v41 }
 0xdfa   :  { %v3029_v39 = vpack.c.bf16 %v3024_v45, %v3020_v44 }
 0xdfc   :  { %3205 = vmatprep.mubr.bf16.mxu1 %v3029_v39 }
 0xdfd   :  { %3206 = vmatmul.mubr.bf16.gmra.mrb[56].mxu1 %v3028_v48 }
 0xdfe   :  { %4876 = vmatprep.mubr.msk.bf16.mxu1 %vm1186_vm7, %v5354_v34 }
 0xec8   :  { %v4628_v51 = vpop.f32.mrb[52].mxu1 }
 0xec9   :  { %v4629_v53 = vpop.f32.mrb[53].mxu1 }
 0xeca   :  { %v4630_v59 = vadd.f32 %v4629_v53, %v4628_v51  ;;  %v4631_v56 = vpop.f32.mrb[54].mxu1  ;;  %v5365_v53 = vld [vmem:[%s6676_s5 + $0x8] sm:$0xff]  }
 0xecb   :  { %v4632_v8 = vpop.f32.mrb[55].mxu1 }
 0xecc   :  { %v3200_v57 = vadd.f32 %v4630_v59, %v4420_v52  ;;  %v4633_v58 = vadd.f32 %v4632_v8, %v4631_v56  ;;  %v5366_v59 = vld [vmem:[%s6676_s5 + $0x10] sm:$0xff]   ;;  %v5373_v56 = vld [vmem:[%s6677_s18 + $0x8] sm:$0xff]  }
 0xecd   :  { %v5374_v8 = vld [vmem:[%s6677_s18 + $0x10] sm:$0xff]  }
 0xece   :  { %v3203_v60 = vadd.f32 %v4633_v58, %v4420_v52  ;;  %v3214_v61 = vmax.f32 %v3200_v57, 0.0  ;;  %v5367_v57 = vld [vmem:[%s6676_s5 + $0x18] sm:$0xff]   ;;  %v5368_v58 = vld [vmem:[%s6676_s5 + $0x20] sm:$0xff]  }
 0xed0   :  { %v3215_v7 = vmax.f32 %v3203_v60, 0.0  ;;  %v4634_v55 = vpop.f32.mrb[56].mxu1  ;;  %v5369_v60 = vld [vmem:[%s6676_s5 + $0x28] sm:$0xff]  }
 0xed1   :  { %v4635_v15 = vpop.f32.mrb[57].mxu1 }
 0xed2   :  { %v4636_v62 = vadd.f32 %v4635_v15, %v4634_v55  ;;  %v4637_v1 = vpop.f32.mrb[58].mxu1  ;;  %v3222_v17 = vpack.c.bf16 %v3215_v7, %v3214_v61  ;;  %v5370_v61 = vld [vmem:[%s6676_s5 + $0x30] sm:$0xff]   ;;  %v5371_v7 = vld [vmem:[%s6676_s5 + $0x38] sm:$0xff]   ;;  %v3457_v15 = vpop.permute.xlu1 %3456 }
 0xed3   :  { %v4638_v19 = vpop.f32.mrb[59].mxu1  ;;  %v5375_v55 = vld [vmem:[%s6677_s18 + $0x18] sm:$0xff]  }
 0xed4   :  { %v3208_v20 = vadd.f32 %v4636_v62, %v4420_v52  ;;  %v4639_v21 = vadd.f32 %v4638_v19, %v4637_v1  ;;  %4872 = vmatprep.subr.bf16.mxu1 %v3222_v17 }
 0xed5   :  { %4873 = vmatpush3.bf16.msra.mxu1 %v3222_v17 }
 0xed6   :  { %v3211_v22 = vadd.f32 %v4639_v21, %v4420_v52  ;;  %v3216_v6 = vmax.f32 %v3208_v20, 0.0  ;;  %v5372_v52 = vld [vmem:[%s6677_s18] sm:$0xff]   ;;  %v3467_v62 = vpop.permute.xlu1 %3466 }
 0xed8   :  { %v3217_v23 = vmax.f32 %v3211_v22, 0.0 }
 0xeda   :  { %v3223_v24 = vpack.c.bf16 %v3217_v23, %v3216_v6  ;;  %v3477_v1 = vpop.permute.xlu1 %3476 }
 0xedc   :  { %4874 = vmatprep.subr.bf16.mxu1 %v3223_v24 }
 0xedd   :  { %4875 = vmatpush3.bf16.msra.mxu1 %v3223_v24 }
 0xede   :  { %4880 = vmatprep.subr.bf16.mxu1 %v5356_v26  ;;  %v3487_v20 = vpop.permute.xlu1 %3486 }
 0xee0   :  { %4877 = vmatmul.mubr.msk.bf16.vlgmr.msra.gmra.mrb[60].mxu1 %vm1186_vm7, %v5355_v25 }
 0xee1   :  { %4881 = vmatpush3.bf16.msra.mxu1 %v5356_v26 }
 0xee2   :  { %4882 = vmatprep.subr.bf16.mxu1 %v5357_v27 }
 0xee5   :  { %4883 = vmatpush3.bf16.msra.mxu1 %v5357_v27 }
 0xee6   :  { %4884 = vmatprep.subr.bf16.mxu1 %v5358_v28 }
 0xee9   :  { %4885 = vmatpush3.bf16.msra.mxu1 %v5358_v28  ;;  %v3497_v28 = vpop.permute.xlu1 %3496 }
 0xeea   :  { %4886 = vmatprep.subr.bf16.mxu1 %v5359_v29 }
 0xeed   :  { %4887 = vmatpush3.bf16.msra.mxu1 %v5359_v29 }
 0xeee   :  { %4888 = vmatprep.subr.bf16.mxu1 %v5360_v30 }
 0xef1   :  { %4889 = vmatpush3.bf16.msra.mxu1 %v5360_v30 }
 0xef2   :  { %4890 = vmatprep.subr.bf16.mxu1 %v5361_v31 }
 0xef5   :  { %4891 = vmatpush3.bf16.msra.mxu1 %v5361_v31 }
 0xef6   :  { %4892 = vmatprep.subr.bf16.mxu1 %v5362_v32 }
 0xef9   :  { %4893 = vmatpush3.bf16.msra.mxu1 %v5362_v32 }
 0xefa   :  { %4894 = vmatprep.subr.bf16.mxu1 %v5363_v33 }
 0xefd   :  { %4895 = vmatpush3.bf16.msra.mxu1 %v5363_v33 }
 0xfb3   :  { %v4878_v63 = vpop.f32.mrb[60].mxu1 }
 0xfb4   :  { %v3274_v2 = vpop.f32.mrb[61].mxu1 }
 0xfb5   :  { %v4879_v3 = vpop.f32.mrb[62].mxu1 }
 0xfb6   :  { %v3290_v4 = vpack.c.bf16 %v4879_v3, %v4878_v63  ;;  %v3277_v5 = vpop.f32.mrb[63].mxu1 }
 0xfb7   :  { %v3289_v46 = vpack.c.bf16 %v3277_v5, %v3274_v2 }
 0xfb9   :  { %4896 = vmatprep.mubr.bf16.mxu1 %v3289_v46 }
 0xfba   :  { %4897 = vmatmul.mubr.bf16.vlgmr.msra.gmra.mrb[64].mxu1 %v3290_v4 }
 0xfbb   :  { %4904 = vmatprep.mubr.msk.bf16.mxu1 %vm1186_vm7, %v5364_v14 }
0x108d   :  { %v4898_v18 = vpop.f32.mrb[64].mxu1 }
0x108e   :  { %v3405_v35 = vadd.f32 %v4898_v18, %v4441_v16  ;;  %v3396_v36 = vpop.f32.mrb[65].mxu1 }
0x108f   :  { %v3397_v38 = vadd.f32 %v4441_v16, %v3396_v36  ;;  %v4899_v40 = vpop.f32.mrb[66].mxu1 }
0x1090   :  { %v3408_v41 = vadd.f32 %v4899_v40, %v4441_v16  ;;  %v3399_v42 = vpop.f32.mrb[67].mxu1  ;;  %v3413_v44 = vmax.f32 %v3405_v35, 0.0 }
0x1091   :  { %v3400_v43 = vadd.f32 %v4441_v16, %v3399_v42  ;;  %v3411_v48 = vmax.f32 %v3397_v38, 0.0 }
0x1092   :  { %v3414_v45 = vmax.f32 %v3408_v41, 0.0 }
0x1093   :  { %v3412_v39 = vmax.f32 %v3400_v43, 0.0 }
0x1094   :  { %v3432_v34 = vpack.c.bf16 %v3414_v45, %v3413_v44 }
0x1095   :  { %v3431_v51 = vpack.c.bf16 %v3412_v39, %v3411_v48 }
0x1097   :  { %4900 = vmatprep.subr.bf16.mxu1 %v3431_v51 }
0x1098   :  { %4901 = vmatpush3.bf16.msra.mxu1 %v3431_v51 }
0x1099   :  { %4902 = vmatprep.subr.bf16.mxu1 %v3432_v34 }
0x109c   :  { %4903 = vmatpush3.bf16.msra.mxu1 %v3432_v34 }
0x109d   :  { %4920 = vmatprep.subr.bf16.mxu1 %v5372_v52 }
0x109f   :  { %4905 = vmatmul.mubr.msk.bf16.vlgmr.msra.gmra.mrb[68].mxu1 %vm1186_vm7, %v5365_v53 }
0x10a0   :  { %4908 = vmatprep.mubr.msk.bf16.mxu1 %vm1186_vm7, %v5366_v59  ;;  %4921 = vmatpush3.bf16.msra.mxu1 %v5372_v52  ;;  %v5376_v52 = vld [vmem:[%s6679_s9] sm:$0xff]  }
0x10a1   :  { %4922 = vmatprep.subr.bf16.mxu1 %v5373_v56  ;;  %4960 = vmatprep.mubr.bf16.mxu0 %v5376_v52  ;;  %v5381_v52 = vld [vmem:[%s6679_s9 + $0x28] sm:$0xff]  }
0x10a4   :  { %4923 = vmatpush3.bf16.msra.mxu1 %v5373_v56 }
0x10a5   :  { %4924 = vmatprep.subr.bf16.mxu1 %v5374_v8 }
0x10a7   :  { %4909 = vmatmul.mubr.msk.bf16.gmra.mrb[72].mxu1 %vm1186_vm7, %v5367_v57 }
0x10a8   :  { %4912 = vmatprep.mubr.msk.bf16.mxu1 %vm1186_vm7, %v5368_v58  ;;  %4925 = vmatpush3.bf16.msra.mxu1 %v5374_v8 }
0x10a9   :  { %4926 = vmatprep.subr.bf16.mxu1 %v5375_v55 }
0x10ac   :  { %4927 = vmatpush3.bf16.msra.mxu1 %v5375_v55 }
0x10ad   :  { %5043 = vmatprep.subr.bf16.mxu1 %v5391_v47 }
0x10af   :  { %4913 = vmatmul.mubr.msk.bf16.gmra.mrb[76].mxu1 %vm1186_vm7, %v5369_v60 }
0x10b0   :  { %4916 = vmatprep.mubr.msk.bf16.mxu1 %vm1186_vm7, %v5370_v61 }
0x10b7   :  { %4917 = vmatmul.mubr.msk.bf16.gmra.mrb[80].mxu1 %vm1186_vm7, %v5371_v7 }
0x1172   :  { %v4906_v17 = vpop.f32.mrb[68].mxu1 }
0x1173   :  { %v3627_v19 = vpop.f32.mrb[69].mxu1  ;;  %v3636_v22 = vadd.f32 %v4906_v17, %v6202_v11 }
0x1174   :  { %v4907_v21 = vpop.f32.mrb[70].mxu1  ;;  %v3628_v24 = vadd.f32 %v3627_v19, %v6200_v10  ;;  %v3507_v10 = vpop.permute.xlu1 %3506 }
0x1175   :  { %v3639_v6 = vadd.f32 %v4907_v21, %v3467_v62  ;;  %v3630_v23 = vpop.f32.mrb[71].mxu1 }
0x1176   :  { %v3631_v26 = vadd.f32 %v3630_v23, %v3457_v15 }
0x1177   :  { %v3691_v25 = vpack.c.bf16 %v3639_v6, %v3636_v22 }
0x1178   :  { %v3690_v27 = vpack.c.bf16 %v3631_v26, %v3628_v24 }
0x117a   :  { %v4910_v29 = vpop.f32.mrb[72].mxu1  ;;  %4928 = vmatprep.mubr.msk.bf16.mxu1 %vm1690_vm8, %v3690_v27 }
0x117b   :  { %v3643_v30 = vpop.f32.mrb[73].mxu1  ;;  %4929 = vmatmul.mubr.msk.bf16.vlgmr.msra.gmra.mrb[84].mxu1 %vm1690_vm8, %v3691_v25  ;;  %v3652_v32 = vadd.f32 %v4910_v29, %v6213_v37  ;;  %v3517_v37 = vpop.permute.xlu1 %3516 }
0x117c   :  { %v4911_v31 = vpop.f32.mrb[74].mxu1  ;;  %v3644_v11 = vadd.f32 %v3643_v30, %v6207_v13 }
0x117d   :  { %v3655_v33 = vadd.f32 %v4911_v31, %v3487_v20  ;;  %v3646_v63 = vpop.f32.mrb[75].mxu1 }
0x117e   :  { %v3647_v2 = vadd.f32 %v3646_v63, %v3477_v1 }
0x117f   :  { %v3693_v3 = vpack.c.bf16 %v3655_v33, %v3652_v32  ;;  %v3527_v43 = vpop.permute.xlu1 %3526 }
0x1180   :  { %v3692_v4 = vpack.c.bf16 %v3647_v2, %v3644_v11 }
0x1182   :  { %v4914_v5 = vpop.f32.mrb[76].mxu1  ;;  %4932 = vmatprep.mubr.msk.bf16.mxu1 %vm1690_vm8, %v3692_v4 }
0x1183   :  { %v3659_v46 = vpop.f32.mrb[77].mxu1  ;;  %4933 = vmatmul.mubr.msk.bf16.gmra.mrb[88].mxu1 %vm1690_vm8, %v3693_v3  ;;  %v3668_v16 = vadd.f32 %v4914_v5, %v6224_v9 }
0x1184   :  { %v4915_v14 = vpop.f32.mrb[78].mxu1  ;;  %v3660_v36 = vadd.f32 %v3659_v46, %v6216_v49 }
0x1185   :  { %v3671_v18 = vadd.f32 %v4915_v14, %v3507_v10  ;;  %v3662_v35 = vpop.f32.mrb[79].mxu1 }
0x1186   :  { %v3663_v38 = vadd.f32 %v3662_v35, %v3497_v28 }
0x1187   :  { %v3695_v13 = vpack.c.bf16 %v3671_v18, %v3668_v16 }
0x1188   :  { %v3694_v40 = vpack.c.bf16 %v3663_v38, %v3660_v36 }
0x118a   :  { %v4918_v41 = vpop.f32.mrb[80].mxu1  ;;  %4936 = vmatprep.mubr.msk.bf16.mxu1 %vm1690_vm8, %v3694_v40 }
0x118b   :  { %v3675_v42 = vpop.f32.mrb[81].mxu1  ;;  %4937 = vmatmul.mubr.msk.bf16.gmra.mrb[92].mxu1 %vm1690_vm8, %v3695_v13  ;;  %v3684_v45 = vadd.f32 %v4918_v41, %v6228_v50  ;;  %v4466_v50 = vld [vmem:[%s6680_s19] ss:$0 sm:$0xff] }
0x118c   :  { %v4919_v44 = vpop.f32.mrb[82].mxu1  ;;  %v3676_v39 = vadd.f32 %v3675_v42, %v6226_v12 }
0x118d   :  { %v3687_v48 = vadd.f32 %v4919_v44, %v3527_v43  ;;  %v3678_v9 = vpop.f32.mrb[83].mxu1 }
0x118e   :  { %v3679_v34 = vadd.f32 %v3678_v9, %v3517_v37 }
0x118f   :  { %v3697_v51 = vpack.c.bf16 %v3687_v48, %v3684_v45 }
0x1190   :  { %v3696_v49 = vpack.c.bf16 %v3679_v34, %v3676_v39  ;;  %v5377_v39 = vld [vmem:[%s6679_s9 + $0x8] sm:$0xff]   ;;  %v5378_v34 = vld [vmem:[%s6679_s9 + $0x10] sm:$0xff]  }
0x1192   :  { %4940 = vmatprep.mubr.msk.bf16.mxu1 %vm1690_vm8, %v3696_v49  ;;  %v5380_v49 = vld [vmem:[%s6679_s9 + $0x20] sm:$0xff]  }
0x1193   :  { %4941 = vmatmul.mubr.msk.bf16.gmra.mrb[96].mxu1 %vm1690_vm8, %v3697_v51  ;;  %v5379_v51 = vld [vmem:[%s6679_s9 + $0x18] sm:$0xff]  }
0x1194   :  { %5008 = vmatprep.mubr.msk.f32.mxu1 %vm5387_vm0, %v5386_v0 }
0x124e   :  { %v4930_v12 = vpop.f32.mrb[84].mxu1 }
0x124f   :  { %v3804_v53 = vadd.f32 %v4930_v12, %v4466_v50  ;;  %v3795_v59 = vpop.f32.mrb[85].mxu1  ;;  %v5383_v12 = vld [vmem:[%s6679_s9 + $0x38] sm:$0xff]  }
0x1250   :  { %v3796_v56 = vadd.f32 %v4466_v50, %v3795_v59  ;;  %v4931_v8 = vpop.f32.mrb[86].mxu1 }
0x1251   :  { %v3807_v57 = vadd.f32 %v4931_v8, %v4466_v50  ;;  %v3798_v58 = vpop.f32.mrb[87].mxu1  ;;  %v3860_v61 = vmax.f32 %v3804_v53, 0.0 }
0x1252   :  { %v3799_v60 = vadd.f32 %v4466_v50, %v3798_v58  ;;  %v3858_v0 = vmax.f32 %v3796_v56, 0.0 }
0x1253   :  { %v3861_v7 = vmax.f32 %v3807_v57, 0.0 }
0x1254   :  { %v3859_v55 = vmax.f32 %v3799_v60, 0.0 }
0x1255   :  { %v3891_v15 = vpack.c.bf16 %v3861_v7, %v3860_v61 }
0x1256   :  { %v3890_v62 = vpack.c.bf16 %v3859_v55, %v3858_v0  ;;  %v4934_v1 = vpop.f32.mrb[88].mxu1 }
0x1257   :  { %v3820_v17 = vadd.f32 %v4934_v1, %v4466_v50  ;;  %v3811_v19 = vpop.f32.mrb[89].mxu1 }
0x1258   :  { %v3812_v20 = vadd.f32 %v4466_v50, %v3811_v19  ;;  %v4935_v21 = vpop.f32.mrb[90].mxu1  ;;  %4944 = vmatprep.subr.bf16.mxu0 %v3890_v62 }
0x1259   :  { %v3823_v22 = vadd.f32 %v4935_v21, %v4466_v50  ;;  %v3814_v6 = vpop.f32.mrb[91].mxu1  ;;  %4945 = vmatpush3.bf16.msra.mxu0 %v3890_v62  ;;  %v3864_v24 = vmax.f32 %v3820_v17, 0.0 }
0x125a   :  { %v3815_v23 = vadd.f32 %v4466_v50, %v3814_v6  ;;  %4946 = vmatprep.subr.bf16.mxu0 %v3891_v15  ;;  %v3862_v25 = vmax.f32 %v3812_v20, 0.0 }
0x125b   :  { %v3865_v26 = vmax.f32 %v3823_v22, 0.0 }
0x125c   :  { %v3863_v27 = vmax.f32 %v3815_v23, 0.0 }
0x125d   :  { %v3893_v28 = vpack.c.bf16 %v3865_v26, %v3864_v24  ;;  %4947 = vmatpush3.bf16.msra.mxu0 %v3891_v15 }
0x125e   :  { %v3892_v29 = vpack.c.bf16 %v3863_v27, %v3862_v25  ;;  %v4938_v30 = vpop.f32.mrb[92].mxu1  ;;  %v4043_v27 = vld [vmem:[%s6681_s20] sm:$0x7] }
0x125f   :  { %v3836_v31 = vadd.f32 %v4938_v30, %v4466_v50  ;;  %v3827_v32 = vpop.f32.mrb[93].mxu1 }
0x1260   :  { %v3828_v33 = vadd.f32 %v4466_v50, %v3827_v32  ;;  %v4939_v63 = vpop.f32.mrb[94].mxu1  ;;  %4948 = vmatprep.subr.bf16.mxu0 %v3892_v29 }
0x1261   :  { %v3839_v11 = vadd.f32 %v4939_v63, %v4466_v50  ;;  %v3830_v2 = vpop.f32.mrb[95].mxu1  ;;  %4949 = vmatpush3.bf16.msra.mxu0 %v3892_v29  ;;  %v3868_v10 = vmax.f32 %v3836_v31, 0.0 }
0x1262   :  { %v3831_v3 = vadd.f32 %v4466_v50, %v3830_v2  ;;  %4950 = vmatprep.subr.bf16.mxu0 %v3893_v28  ;;  %v3866_v5 = vmax.f32 %v3828_v33, 0.0 }
0x1263   :  { %v3869_v4 = vmax.f32 %v3839_v11, 0.0 }
0x1264   :  { %v3867_v46 = vmax.f32 %v3831_v3, 0.0 }
0x1265   :  { %v3895_v14 = vpack.c.bf16 %v3869_v4, %v3868_v10  ;;  %4951 = vmatpush3.bf16.msra.mxu0 %v3893_v28  ;;  %v4048_v28 = vpop.permute.xlu1 %4047 }
0x1266   :  { %v3894_v16 = vpack.c.bf16 %v3867_v46, %v3866_v5  ;;  %v4942_v18 = vpop.f32.mrb[96].mxu1 }
0x1267   :  { %v3852_v35 = vadd.f32 %v4942_v18, %v4466_v50  ;;  %v3843_v37 = vpop.f32.mrb[97].mxu1 }
0x1268   :  { %v3844_v36 = vadd.f32 %v4466_v50, %v3843_v37  ;;  %v4943_v38 = vpop.f32.mrb[98].mxu1  ;;  %4952 = vmatprep.subr.bf16.mxu0 %v3894_v16 }
0x1269   :  { %v3855_v13 = vadd.f32 %v4943_v38, %v4466_v50  ;;  %v3846_v40 = vpop.f32.mrb[99].mxu1  ;;  %4953 = vmatpush3.bf16.msra.mxu0 %v3894_v16  ;;  %v3872_v42 = vmax.f32 %v3852_v35, 0.0 }
0x126a   :  { %v3847_v41 = vadd.f32 %v4466_v50, %v3846_v40  ;;  %4954 = vmatprep.subr.bf16.mxu0 %v3895_v14  ;;  %v3870_v44 = vmax.f32 %v3844_v36, 0.0  ;;  %v5382_v50 = vld [vmem:[%s6679_s9 + $0x30] sm:$0xff]  }
0x126b   :  { %v3873_v43 = vmax.f32 %v3855_v13, 0.0 }
0x126c   :  { %v3871_v45 = vmax.f32 %v3847_v41, 0.0 }
0x126d   :  { %v3897_v48 = vpack.c.bf16 %v3873_v43, %v3872_v42  ;;  %4955 = vmatpush3.bf16.msra.mxu0 %v3895_v14 }
0x126e   :  { %v3896_v9 = vpack.c.bf16 %v3871_v45, %v3870_v44 }
0x1270   :  { %4956 = vmatprep.subr.bf16.mxu0 %v3896_v9 }
0x1271   :  { %4957 = vmatpush3.bf16.msra.mxu0 %v3896_v9 }
0x1272   :  { %4958 = vmatprep.subr.bf16.mxu0 %v3897_v48 }
0x1275   :  { %4959 = vmatpush3.bf16.msra.mxu0 %v3897_v48 }
0x1278   :  { %4961 = vmatmul.mubr.bf16.vlgmr.msra.gmra.mrb[80].mxu0 %v5377_v39 }
0x1279   :  { %4964 = vmatprep.mubr.bf16.mxu0 %v5378_v34 }
0x1280   :  { %4965 = vmatmul.mubr.bf16.gmra.mrb[84].mxu0 %v5379_v51 }
0x1281   :  { %4968 = vmatprep.mubr.bf16.mxu0 %v5380_v49 }
0x1288   :  { %4969 = vmatmul.mubr.bf16.gmra.mrb[88].mxu0 %v5381_v52 }
0x1289   :  { %4972 = vmatprep.mubr.bf16.mxu0 %v5382_v50 }
0x1290   :  { %4973 = vmatmul.mubr.bf16.gmra.mrb[92].mxu0 %v5383_v12 }
0x134b   :  { %v4962_v53 = vpop.f32.mrb[80].mxu0 }
0x134c   :  { %v3980_v59 = vpop.f32.mrb[81].mxu0 }
0x134d   :  { %v4963_v56 = vpop.f32.mrb[82].mxu0 }
0x134e   :  { %v5048_v8 = vpack.c.bf16 %v4963_v56, %v4962_v53  ;;  %v3983_v57 = vpop.f32.mrb[83].mxu0 }
0x134f   :  { %v5044_v58 = vpack.c.bf16 %v3983_v57, %v3980_v59 }
0x1351   :  { %5046 = vmatpush3.bf16.xpose.msk.msra.mxu1 %vm6155_vm10, %v5044_v58 }
0x1352   :  { %5047 = vmatprep.subr.bf16.mxu1 %v5391_v47 }
0x1353   :  { %v4966_v60 = vpop.f32.mrb[84].mxu0 }
0x1354   :  { %v3996_v61 = vpop.f32.mrb[85].mxu0 }
0x1355   :  { %v4967_v7 = vpop.f32.mrb[86].mxu0 }
0x1356   :  { %v5056_v0 = vpack.c.bf16 %v4967_v7, %v4966_v60  ;;  %v3999_v55 = vpop.f32.mrb[87].mxu0 }
0x1357   :  { %v5052_v15 = vpack.c.bf16 %v3999_v55, %v3996_v61 }
0x1359   :  { %5050 = vmatpush3.bf16.xpose.msk.msra.mxu1 %vm6155_vm10, %v5048_v8 }
0x135a   :  { %5051 = vmatprep.subr.bf16.mxu1 %v5391_v47 }
0x135b   :  { %v4970_v62 = vpop.f32.mrb[88].mxu0 }
0x135c   :  { %v4012_v1 = vpop.f32.mrb[89].mxu0 }
0x135d   :  { %v4971_v17 = vpop.f32.mrb[90].mxu0 }
0x135e   :  { %v5064_v19 = vpack.c.bf16 %v4971_v17, %v4970_v62  ;;  %v4015_v20 = vpop.f32.mrb[91].mxu0 }
0x135f   :  { %v5060_v21 = vpack.c.bf16 %v4015_v20, %v4012_v1 }
0x1361   :  { %5054 = vmatpush3.bf16.xpose.msk.msra.mxu1 %vm6155_vm10, %v5052_v15 }
0x1362   :  { %5055 = vmatprep.subr.bf16.mxu1 %v5391_v47 }
0x1363   :  { %v4974_v22 = vpop.f32.mrb[92].mxu0 }
0x1364   :  { %v4028_v6 = vpop.f32.mrb[93].mxu0 }
0x1365   :  { %v4975_v23 = vpop.f32.mrb[94].mxu0 }
0x1366   :  { %v5072_v24 = vpack.c.bf16 %v4975_v23, %v4974_v22  ;;  %v4031_v26 = vpop.f32.mrb[95].mxu0 }
0x1367   :  { %v5068_v25 = vpack.c.bf16 %v4031_v26, %v4028_v6 }
0x1369   :  { %5058 = vmatpush3.bf16.xpose.msk.msra.mxu1 %vm6155_vm10, %v5056_v0 }
0x136a   :  { %5059 = vmatprep.subr.bf16.mxu1 %v5391_v47 }
0x1371   :  { %5062 = vmatpush3.bf16.xpose.msk.msra.mxu1 %vm6155_vm10, %v5060_v21 }
0x1372   :  { %5063 = vmatprep.subr.bf16.mxu1 %v5391_v47 }
0x1379   :  { %5066 = vmatpush3.bf16.xpose.msk.msra.mxu1 %vm6155_vm10, %v5064_v19 }
0x137a   :  { %5067 = vmatprep.subr.bf16.mxu1 %v5391_v47 }
0x1381   :  { %5070 = vmatpush3.bf16.xpose.msk.msra.mxu1 %vm6155_vm10, %v5068_v25 }
0x1382   :  { %5071 = vmatprep.subr.bf16.mxu1 %v5391_v47 }
0x1389   :  { %5074 = vmatpush3.bf16.xpose.msk.msra.mxu1 %vm6155_vm10, %v5072_v24 }
0x1390   :  { %5009 = vmatmul.mubr.msk.f32.vlgmr.msra.gmra.mrb[100].mxu1 %vm2004_vm9, %v4043_v27 }
0x1463   :  { %v4167_v29 = vpop.f32.mrb[100].mxu1 }
0x1464   :  { %v4168_v30 = vadd.f32 %v4167_v29, %v4048_v28  ;;  %v5010_v31 = vpop.f32.mrb[101].mxu1 }
0x1466   :  { %4504 = vst [vmem:[%s6682_s22 + $0x4] sm:$0x7] %v4168_v30 }

</bundles_post_ra>
